<compile_context>
chip_gen: v7x
topology: tpu7x:2x2x1
jax: 0.10.0
libtpu: 0.0.40
codegen_flags: <defaults>
</compile_context>

<pallas_src>
import jax
import jax.numpy as jnp
from jax import lax
from jax.experimental import pallas as pl
from jax.experimental.pallas import tpu as pltpu

_VMEM_SPEC = pl.BlockSpec(memory_space=pltpu.MemorySpace.VMEM)
_BN_EPS = 1e-5


# ----------------------------------------------------------------------------
# Pallas kernels
# ----------------------------------------------------------------------------
def _conv_bn_relu_kernel(p_ref, w_ref, gamma_ref, beta_ref, o_ref):
    """Fused (im2col-patches @ W) -> training-mode batch-norm -> ReLU.

    Conv bias omitted (cancelled by the BN mean subtraction).
    """
    acc = jnp.dot(p_ref[...], w_ref[...], preferred_element_type=jnp.float32)
    mean = jnp.mean(acc, axis=0, keepdims=True)
    var = jnp.mean(acc * acc, axis=0, keepdims=True) - mean * mean
    y = (acc - mean) * lax.rsqrt(var + _BN_EPS) * gamma_ref[...] + beta_ref[...]
    o_ref[...] = jnp.maximum(y, 0.0)


def _bigru_kernel(x_ref, wi_ref, bi_ref, wh_ref, bh_ref, h0_ref,
                  out_ref, hT_ref, xp_ref):
    """Fused bidirectional GRU (input projection + both directions, PyTorch gates).

    x_ref : (T*B, In)  time-major flattened sequence (row = t*B + b)
    wi_ref: (In, 6H)   [W_ih_f^T | W_ih_b^T], gate order (r,z,n) inside each half
    bi_ref: (1, 6H)
    wh_ref: (2H, 6H)   block-diag(W_hh_f^T, W_hh_b^T)
    bh_ref: (1, 6H)
    h0_ref: (B, 2H)    [h0_f | h0_b]
    out_ref:(T*B, 2H)  time-major outputs, cols [forward | backward]
    hT_ref: (B, 2H)    final hidden states
    xp_ref: VMEM scratch (T*B, 6H) for the precomputed input projections
    """
    B = h0_ref.shape[0]
    H = h0_ref.shape[1] // 2
    T = x_ref.shape[0] // B

    # One wide matmul: input projections for all timesteps and both directions.
    xp_ref[...] = (jnp.dot(x_ref[...], wi_ref[...],
                           preferred_element_type=jnp.float32) + bi_ref[...])

    def step(t, h):
        # Single matmul for the hidden projections of both directions.
        gh = (jnp.dot(h, wh_ref[...], preferred_element_type=jnp.float32)
              + bh_ref[...])                                          # (B, 6H)
        xf = xp_ref[pl.ds(t * B, B), pl.ds(0, 3 * H)]                 # fwd, time t
        xb = xp_ref[pl.ds((T - 1 - t) * B, B), pl.ds(3 * H, 3 * H)]   # bwd, time T-1-t
        ghf, ghb = gh[:, :3 * H], gh[:, 3 * H:]
        hf, hb = h[:, :H], h[:, H:]

        rf = jax.nn.sigmoid(xf[:, :H] + ghf[:, :H])
        zf = jax.nn.sigmoid(xf[:, H:2 * H] + ghf[:, H:2 * H])
        nf = jnp.tanh(xf[:, 2 * H:] + rf * ghf[:, 2 * H:])
        hf_new = (1.0 - zf) * nf + zf * hf

        rb = jax.nn.sigmoid(xb[:, :H] + ghb[:, :H])
        zb = jax.nn.sigmoid(xb[:, H:2 * H] + ghb[:, H:2 * H])
        nb = jnp.tanh(xb[:, 2 * H:] + rb * ghb[:, 2 * H:])
        hb_new = (1.0 - zb) * nb + zb * hb

        out_ref[pl.ds(t * B, B), pl.ds(0, H)] = hf_new
        out_ref[pl.ds((T - 1 - t) * B, B), pl.ds(H, H)] = hb_new
        return jnp.concatenate([hf_new, hb_new], axis=1)

    # T is small and static -> fully unrolled recurrence for scheduler visibility.
    hT_ref[...] = lax.fori_loop(0, T, step, h0_ref[...], unroll=True)


# ----------------------------------------------------------------------------
# Glue (plain JAX): im2col, pallas_call wrappers
# ----------------------------------------------------------------------------
def _im2col(x_nhwc, kh, kw, sh, sw):
    """x: (B, H, W, C) -> patches (B*Ho*Wo, kh*kw*C), flatten order (kh, kw, C)."""
    B, H, W, C = x_nhwc.shape
    Ho = (H - kh) // sh + 1
    Wo = (W - kw) // sw + 1
    cols = []
    for di in range(kh):
        for dj in range(kw):
            cols.append(x_nhwc[:, di:di + (Ho - 1) * sh + 1:sh,
                               dj:dj + (Wo - 1) * sw + 1:sw, :])      # (B, Ho, Wo, C)
    patches = jnp.concatenate(cols, axis=-1)                          # (B, Ho, Wo, kh*kw*C)
    return patches.reshape(B * Ho * Wo, kh * kw * C), Ho, Wo


def conv_bn_relu(x_nhwc, w_oihw, gamma, beta, stride):
    cout, cin, kh, kw = w_oihw.shape
    sh, sw = stride
    patches, Ho, Wo = _im2col(x_nhwc, kh, kw, sh, sw)
    # (Cout, Cin, kh, kw) -> (kh, kw, Cin, Cout) -> (kh*kw*Cin, Cout)
    wmat = jnp.transpose(w_oihw, (2, 3, 1, 0)).reshape(kh * kw * cin, cout)
    # Small shapes: whole arrays resident in VMEM, no grid.  At larger B/H/W this
    # should become a row-tiled grid with a two-pass BN (stats, then normalize).
    out = pl.pallas_call(
        _conv_bn_relu_kernel,
        out_shape=jax.ShapeDtypeStruct((patches.shape[0], cout), jnp.float32),
        in_specs=[_VMEM_SPEC] * 4,
        out_specs=_VMEM_SPEC,
    )(patches, wmat, gamma.reshape(1, -1), beta.reshape(1, -1))
    B = x_nhwc.shape[0]
    return out.reshape(B, Ho, Wo, cout)


def gru_bidirectional(seq, h0, gru_params):
    """seq: (B, T, In); h0: (2, B, H).  Returns out (B, T, 2H), hidden (2, B, H)."""
    B, T, In = seq.shape
    H = h0.shape[-1]
    (Wif, Whf, bif, bhf), (Wib, Whb, bib, bhb) = gru_params

    x_flat = jnp.transpose(seq, (1, 0, 2)).reshape(T * B, In)         # time-major
    wi_cat = jnp.concatenate([Wif.T, Wib.T], axis=1)                  # (In, 6H)
    bi_cat = jnp.concatenate([bif, bib]).reshape(1, -1)               # (1, 6H)
    zeros = jnp.zeros((H, 3 * H), jnp.float32)
    wh_cat = jnp.concatenate(
        [jnp.concatenate([Whf.T, zeros], axis=1),
         jnp.concatenate([zeros, Whb.T], axis=1)], axis=0)            # (2H, 6H)
    bh_cat = jnp.concatenate([bhf, bhb]).reshape(1, -1)               # (1, 6H)
    h0_cat = jnp.concatenate([h0[0], h0[1]], axis=1)                  # (B, 2H)

    out_flat, hT = pl.pallas_call(
        _bigru_kernel,
        out_shape=(jax.ShapeDtypeStruct((T * B, 2 * H), jnp.float32),
                   jax.ShapeDtypeStruct((B, 2 * H), jnp.float32)),
        in_specs=[_VMEM_SPEC] * 6,
        out_specs=(_VMEM_SPEC, _VMEM_SPEC),
        scratch_shapes=[pltpu.VMEM((T * B, 6 * H), jnp.float32)],
    )(x_flat, wi_cat, bi_cat, wh_cat, bh_cat, h0_cat)

    out = jnp.transpose(out_flat.reshape(T, B, 2 * H), (1, 0, 2))     # (B, T, 2H)
    hidden = jnp.stack([hT[:, :H], hT[:, H:]], axis=0)                # (2, B, H)
    return out, hidden


def encoder_forward(x_nchw, h0, p):
    x = jnp.transpose(x_nchw, (0, 2, 3, 1))                           # NCHW -> NHWC
    x = conv_bn_relu(x, p['conv1_w'], p['bn1_g'], p['bn1_b'], (3, 2))
    x = conv_bn_relu(x, p['conv2_w'], p['bn2_g'], p['bn2_b'], (4, 2))
    x = conv_bn_relu(x, p['conv3_w'], p['bn3_g'], p['bn3_b'], (1, 1))
    # x: (B, 1, T, 32)  ==  torch squeeze(2) + transpose(1,2)  ->  (B, T, 32)
    seq = x[:, 0, :, :]
    return gru_bidirectional(seq, h0, p['gru'])


# ----------------------------------------------------------------------------
# Pure-JAX reference (literal translation, incl. conv bias) for a sanity check
# ----------------------------------------------------------------------------
def _conv_bn_relu_ref(x, w, b, g, beta, stride):
    y = lax.conv_general_dilated(x, w, window_strides=stride, padding='VALID',
                                 dimension_numbers=('NCHW', 'OIHW', 'NCHW'))
    y = y + b[None, :, None, None]
    mean = jnp.mean(y, axis=(0, 2, 3), keepdims=True)
    var = jnp.mean((y - mean) ** 2, axis=(0, 2, 3), keepdims=True)
    y = (y - mean) / jnp.sqrt(var + _BN_EPS) * g[None, :, None, None] + beta[None, :, None, None]
    return jnp.maximum(y, 0.0)


def _gru_ref(x, h0, gru_params):
    B, T, In = x.shape
    H = h0.shape[-1]

    def run_dir(x_dir, h, W_ih, W_hh, b_ih, b_hh):
        outs = []
        for t in range(T):
            xt = x_dir[:, t, :]
            gi = xt @ W_ih.T + b_ih
            gh = h @ W_hh.T + b_hh
            r = jax.nn.sigmoid(gi[:, :H] + gh[:, :H])
            z = jax.nn.sigmoid(gi[:, H:2 * H] + gh[:, H:2 * H])
            n = jnp.tanh(gi[:, 2 * H:] + r * gh[:, 2 * H:])
            h = (1.0 - z) * n + z * h
            outs.append(h)
        return jnp.stack(outs, axis=1), h

    of, hf = run_dir(x, h0[0], *gru_params[0])
    ob, hb = run_dir(x[:, ::-1, :], h0[1], *gru_params[1])
    ob = ob[:, ::-1, :]
    return jnp.concatenate([of, ob], axis=-1), jnp.stack([hf, hb], axis=0)


def reference_forward(x, h0, p):
    y = _conv_bn_relu_ref(x, p['conv1_w'], p['conv1_b'], p['bn1_g'], p['bn1_b'], (3, 2))
    y = _conv_bn_relu_ref(y, p['conv2_w'], p['conv2_b'], p['bn2_g'], p['bn2_b'], (4, 2))
    y = _conv_bn_relu_ref(y, p['conv3_w'], p['conv3_b'], p['bn3_g'], p['bn3_b'], (1, 1))
    seq = jnp.transpose(jnp.squeeze(y, axis=2), (0, 2, 1))
    return _gru_ref(seq, h0, p['gru'])


# ----------------------------------------------------------------------------
# Deterministic parameter init (shapes follow Encoder.__init__)
# ----------------------------------------------------------------------------
def init_params(key, hidden_size=32):
    H = hidden_size // 2
    In = 32
    ks = jax.random.split(key, 20)

    def nrm(k, shape, s=0.1):
        return s * jax.random.normal(k, shape, jnp.float32)

    p = {
        'conv1_w': nrm(ks[0], (32, 3, 3, 4)),  'conv1_b': nrm(ks[1], (32,), 0.05),
        'bn1_g': 1.0 + nrm(ks[2], (32,), 0.05), 'bn1_b': nrm(ks[3], (32,), 0.05),
        'conv2_w': nrm(ks[4], (32, 32, 4, 3)), 'conv2_b': nrm(ks[5], (32,), 0.05),
        'bn2_g': 1.0 + nrm(ks[6], (32,), 0.05), 'bn2_b': nrm(ks[7], (32,), 0.05),
        'conv3_w': nrm(ks[8], (32, 32, 4, 2)), 'conv3_b': nrm(ks[9], (32,), 0.05),
        'bn3_g': 1.0 + nrm(ks[10], (32,), 0.05), 'bn3_b': nrm(ks[11], (32,), 0.05),
    }
    gru = []
    for d in range(2):  # forward, reverse
        base = 12 + 4 * d
        gru.append((nrm(ks[base], (3 * H, In)),         # weight_ih_l0[_reverse]
                    nrm(ks[base + 1], (3 * H, H)),      # weight_hh_l0[_reverse]
                    nrm(ks[base + 2], (3 * H,), 0.05),  # bias_ih
                    nrm(ks[base + 3], (3 * H,), 0.05)))  # bias_hh
    p['gru'] = gru
    return p


# ----------------------------------------------------------------------------
if __name__ == "__main__":
    key = jax.random.PRNGKey(0)
    kp, kx = jax.random.split(key)

    # Small shapes consistent with the module: input height 48 so the conv stack
    # collapses H to 1 (48 -> 16 -> 4 -> 1); width 20 -> T = 3.
    B, Cin, Hin, Win = 2, 3, 48, 20
    num_layer, hidden_size = 1, 32
    H_half = hidden_size // 2

    params = init_params(kp, hidden_size)
    x = jax.random.normal(kx, (B, Cin, Hin, Win), jnp.float32)
    h0 = jnp.zeros((num_layer * 2, B, H_half), jnp.float32)   # Encoder.init_hidden

    fwd = jax.jit(encoder_forward)
    out, hidden = fwd(x, h0, params)
    jax.block_until_ready((out, hidden))

    # Sanity check against the pure-JAX reference.
    out_ref, hid_ref = reference_forward(x, h0, params)
    assert out.shape == (B, 3, hidden_size), out.shape
    assert hidden.shape == (num_layer * 2, B, H_half), hidden.shape
    assert jnp.isfinite(out).all() and jnp.isfinite(hidden).all()
    err_o = float(jnp.max(jnp.abs(out - out_ref)))
    err_h = float(jnp.max(jnp.abs(hidden - hid_ref)))
    assert err_o < 1e-3 and err_h < 1e-3, (err_o, err_h)

    print("KERNEL_OK")
</pallas_src>

<mosaic_0001>
module attributes {stable_mosaic.version = 11 : i64} {
  func.func @_conv_bn_relu_kernel(%arg0: memref<288x36xf32, #tpu.memory_space<vmem>>, %arg1: memref<36x32xf32, #tpu.memory_space<vmem>>, %arg2: memref<1x32xf32, #tpu.memory_space<vmem>>, %arg3: memref<1x32xf32, #tpu.memory_space<vmem>>, %arg4: memref<288x32xf32, #tpu.memory_space<vmem>>) attributes {dimension_semantics = [], scalar_prefetch = 0 : i64, scratch_operands = 0 : i64, tpu.core_type = #tpu.core_type<tc>} {
    %c0 = arith.constant 0 : index
    %c0_0 = arith.constant 0 : index
    %0 = vector.load %arg0[%c0, %c0_0] : memref<288x36xf32, #tpu.memory_space<vmem>>, vector<288x36xf32>
    %c0_1 = arith.constant 0 : index
    %c0_2 = arith.constant 0 : index
    %1 = vector.load %arg1[%c0_1, %c0_2] : memref<36x32xf32, #tpu.memory_space<vmem>>, vector<36x32xf32>
    %cst = arith.constant dense<0.000000e+00> : vector<288x32xf32>
    %2 = tpu.matmul %0, %1, %cst {dimension_numbers = #tpu.dot_dimension_numbers<[1], [0], [0], [1], [0, 0, 1, 1], [], []>} : vector<288x36xf32>, vector<36x32xf32>, vector<288x32xf32> -> vector<288x32xf32>
    %cst_3 = arith.constant dense<0.000000e+00> : vector<32xf32>
    %3 = vector.multi_reduction <add>, %2, %cst_3 [0] : vector<288x32xf32> to vector<32xf32>
    %4 = vector.shape_cast %3 : vector<32xf32> to vector<1x32xf32>
    %cst_4 = arith.constant 2.880000e+02 : f32
    %5 = vector.broadcast %cst_4 : f32 to vector<1x32xf32>
    %6 = arith.divf %4, %5 : vector<1x32xf32>
    %7 = arith.mulf %2, %2 : vector<288x32xf32>
    %cst_5 = arith.constant dense<0.000000e+00> : vector<32xf32>
    %8 = vector.multi_reduction <add>, %7, %cst_5 [0] : vector<288x32xf32> to vector<32xf32>
    %9 = vector.shape_cast %8 : vector<32xf32> to vector<1x32xf32>
    %cst_6 = arith.constant 2.880000e+02 : f32
    %10 = vector.broadcast %cst_6 : f32 to vector<1x32xf32>
    %11 = arith.divf %9, %10 : vector<1x32xf32>
    %12 = arith.mulf %6, %6 : vector<1x32xf32>
    %13 = arith.subf %11, %12 : vector<1x32xf32>
    %14 = vector.broadcast %6 : vector<1x32xf32> to vector<288x32xf32>
    %15 = arith.subf %2, %14 : vector<288x32xf32>
    %cst_7 = arith.constant 9.99999974E-6 : f32
    %16 = vector.broadcast %cst_7 : f32 to vector<1x32xf32>
    %17 = arith.addf %13, %16 : vector<1x32xf32>
    %18 = math.rsqrt %17 : vector<1x32xf32>
    %19 = vector.broadcast %18 : vector<1x32xf32> to vector<288x32xf32>
    %20 = arith.mulf %15, %19 : vector<288x32xf32>
    %c0_8 = arith.constant 0 : index
    %c0_9 = arith.constant 0 : index
    %21 = vector.load %arg2[%c0_8, %c0_9] : memref<1x32xf32, #tpu.memory_space<vmem>>, vector<1x32xf32>
    %22 = vector.broadcast %21 : vector<1x32xf32> to vector<288x32xf32>
    %23 = arith.mulf %20, %22 : vector<288x32xf32>
    %c0_10 = arith.constant 0 : index
    %c0_11 = arith.constant 0 : index
    %24 = vector.load %arg3[%c0_10, %c0_11] : memref<1x32xf32, #tpu.memory_space<vmem>>, vector<1x32xf32>
    %25 = vector.broadcast %24 : vector<1x32xf32> to vector<288x32xf32>
    %26 = arith.addf %23, %25 : vector<288x32xf32>
    %cst_12 = arith.constant 0.000000e+00 : f32
    %27 = vector.broadcast %cst_12 : f32 to vector<288x32xf32>
    %28 = arith.maximumf %26, %27 : vector<288x32xf32>
    %c0_13 = arith.constant 0 : index
    %c0_14 = arith.constant 0 : index
    %29 = vector.load %arg4[%c0_13, %c0_14] : memref<288x32xf32, #tpu.memory_space<vmem>>, vector<288x32xf32>
    tpu.vector_store %arg4[%c0_13, %c0_14], %28 {strides = array<i32>} : memref<288x32xf32, #tpu.memory_space<vmem>>, vector<288x32xf32>,
    return
  }
}

module attributes {stable_mosaic.version = 11 : i64} {
  func.func @_conv_bn_relu_kernel(%arg0: memref<32x384xf32, #tpu.memory_space<vmem>>, %arg1: memref<384x32xf32, #tpu.memory_space<vmem>>, %arg2: memref<1x32xf32, #tpu.memory_space<vmem>>, %arg3: memref<1x32xf32, #tpu.memory_space<vmem>>, %arg4: memref<32x32xf32, #tpu.memory_space<vmem>>) attributes {dimension_semantics = [], scalar_prefetch = 0 : i64, scratch_operands = 0 : i64, tpu.core_type = #tpu.core_type<tc>} {
    %c0 = arith.constant 0 : index
    %c0_0 = arith.constant 0 : index
    %0 = vector.load %arg0[%c0, %c0_0] : memref<32x384xf32, #tpu.memory_space<vmem>>, vector<32x384xf32>
    %c0_1 = arith.constant 0 : index
    %c0_2 = arith.constant 0 : index
    %1 = vector.load %arg1[%c0_1, %c0_2] : memref<384x32xf32, #tpu.memory_space<vmem>>, vector<384x32xf32>
    %cst = arith.constant dense<0.000000e+00> : vector<32x32xf32>
    %2 = tpu.matmul %0, %1, %cst {dimension_numbers = #tpu.dot_dimension_numbers<[1], [0], [0], [1], [0, 0, 1, 1], [], []>} : vector<32x384xf32>, vector<384x32xf32>, vector<32x32xf32> -> vector<32x32xf32>
    %cst_3 = arith.constant dense<0.000000e+00> : vector<32xf32>
    %3 = vector.multi_reduction <add>, %2, %cst_3 [0] : vector<32x32xf32> to vector<32xf32>
    %4 = vector.shape_cast %3 : vector<32xf32> to vector<1x32xf32>
    %cst_4 = arith.constant 3.200000e+01 : f32
    %5 = vector.broadcast %cst_4 : f32 to vector<1x32xf32>
    %6 = arith.divf %4, %5 : vector<1x32xf32>
    %7 = arith.mulf %2, %2 : vector<32x32xf32>
    %cst_5 = arith.constant dense<0.000000e+00> : vector<32xf32>
    %8 = vector.multi_reduction <add>, %7, %cst_5 [0] : vector<32x32xf32> to vector<32xf32>
    %9 = vector.shape_cast %8 : vector<32xf32> to vector<1x32xf32>
    %cst_6 = arith.constant 3.200000e+01 : f32
    %10 = vector.broadcast %cst_6 : f32 to vector<1x32xf32>
    %11 = arith.divf %9, %10 : vector<1x32xf32>
    %12 = arith.mulf %6, %6 : vector<1x32xf32>
    %13 = arith.subf %11, %12 : vector<1x32xf32>
    %14 = vector.broadcast %6 : vector<1x32xf32> to vector<32x32xf32>
    %15 = arith.subf %2, %14 : vector<32x32xf32>
    %cst_7 = arith.constant 9.99999974E-6 : f32
    %16 = vector.broadcast %cst_7 : f32 to vector<1x32xf32>
    %17 = arith.addf %13, %16 : vector<1x32xf32>
    %18 = math.rsqrt %17 : vector<1x32xf32>
    %19 = vector.broadcast %18 : vector<1x32xf32> to vector<32x32xf32>
    %20 = arith.mulf %15, %19 : vector<32x32xf32>
    %c0_8 = arith.constant 0 : index
    %c0_9 = arith.constant 0 : index
    %21 = vector.load %arg2[%c0_8, %c0_9] : memref<1x32xf32, #tpu.memory_space<vmem>>, vector<1x32xf32>
    %22 = vector.broadcast %21 : vector<1x32xf32> to vector<32x32xf32>
    %23 = arith.mulf %20, %22 : vector<32x32xf32>
    %c0_10 = arith.constant 0 : index
    %c0_11 = arith.constant 0 : index
    %24 = vector.load %arg3[%c0_10, %c0_11] : memref<1x32xf32, #tpu.memory_space<vmem>>, vector<1x32xf32>
    %25 = vector.broadcast %24 : vector<1x32xf32> to vector<32x32xf32>
    %26 = arith.addf %23, %25 : vector<32x32xf32>
    %cst_12 = arith.constant 0.000000e+00 : f32
    %27 = vector.broadcast %cst_12 : f32 to vector<32x32xf32>
    %28 = arith.maximumf %26, %27 : vector<32x32xf32>
    %c0_13 = arith.constant 0 : index
    %c0_14 = arith.constant 0 : index
    %29 = vector.load %arg4[%c0_13, %c0_14] : memref<32x32xf32, #tpu.memory_space<vmem>>, vector<32x32xf32>
    tpu.vector_store %arg4[%c0_13, %c0_14], %28 {strides = array<i32>} : memref<32x32xf32, #tpu.memory_space<vmem>>, vector<32x32xf32>,
    return
  }
}

module attributes {stable_mosaic.version = 11 : i64} {
  func.func @_conv_bn_relu_kernel(%arg0: memref<6x256xf32, #tpu.memory_space<vmem>>, %arg1: memref<256x32xf32, #tpu.memory_space<vmem>>, %arg2: memref<1x32xf32, #tpu.memory_space<vmem>>, %arg3: memref<1x32xf32, #tpu.memory_space<vmem>>, %arg4: memref<6x32xf32, #tpu.memory_space<vmem>>) attributes {dimension_semantics = [], scalar_prefetch = 0 : i64, scratch_operands = 0 : i64, tpu.core_type = #tpu.core_type<tc>} {
    %c0 = arith.constant 0 : index
    %c0_0 = arith.constant 0 : index
    %0 = vector.load %arg0[%c0, %c0_0] : memref<6x256xf32, #tpu.memory_space<vmem>>, vector<6x256xf32>
    %c0_1 = arith.constant 0 : index
    %c0_2 = arith.constant 0 : index
    %1 = vector.load %arg1[%c0_1, %c0_2] : memref<256x32xf32, #tpu.memory_space<vmem>>, vector<256x32xf32>
    %cst = arith.constant dense<0.000000e+00> : vector<6x32xf32>
    %2 = tpu.matmul %0, %1, %cst {dimension_numbers = #tpu.dot_dimension_numbers<[1], [0], [0], [1], [0, 0, 1, 1], [], []>} : vector<6x256xf32>, vector<256x32xf32>, vector<6x32xf32> -> vector<6x32xf32>
    %cst_3 = arith.constant dense<0.000000e+00> : vector<32xf32>
    %3 = vector.multi_reduction <add>, %2, %cst_3 [0] : vector<6x32xf32> to vector<32xf32>
    %4 = vector.shape_cast %3 : vector<32xf32> to vector<1x32xf32>
    %cst_4 = arith.constant 6.000000e+00 : f32
    %5 = vector.broadcast %cst_4 : f32 to vector<1x32xf32>
    %6 = arith.divf %4, %5 : vector<1x32xf32>
    %7 = arith.mulf %2, %2 : vector<6x32xf32>
    %cst_5 = arith.constant dense<0.000000e+00> : vector<32xf32>
    %8 = vector.multi_reduction <add>, %7, %cst_5 [0] : vector<6x32xf32> to vector<32xf32>
    %9 = vector.shape_cast %8 : vector<32xf32> to vector<1x32xf32>
    %cst_6 = arith.constant 6.000000e+00 : f32
    %10 = vector.broadcast %cst_6 : f32 to vector<1x32xf32>
    %11 = arith.divf %9, %10 : vector<1x32xf32>
    %12 = arith.mulf %6, %6 : vector<1x32xf32>
    %13 = arith.subf %11, %12 : vector<1x32xf32>
    %14 = vector.broadcast %6 : vector<1x32xf32> to vector<6x32xf32>
    %15 = arith.subf %2, %14 : vector<6x32xf32>
    %cst_7 = arith.constant 9.99999974E-6 : f32
    %16 = vector.broadcast %cst_7 : f32 to vector<1x32xf32>
    %17 = arith.addf %13, %16 : vector<1x32xf32>
    %18 = math.rsqrt %17 : vector<1x32xf32>
    %19 = vector.broadcast %18 : vector<1x32xf32> to vector<6x32xf32>
    %20 = arith.mulf %15, %19 : vector<6x32xf32>
    %c0_8 = arith.constant 0 : index
    %c0_9 = arith.constant 0 : index
    %21 = vector.load %arg2[%c0_8, %c0_9] : memref<1x32xf32, #tpu.memory_space<vmem>>, vector<1x32xf32>
    %22 = vector.broadcast %21 : vector<1x32xf32> to vector<6x32xf32>
    %23 = arith.mulf %20, %22 : vector<6x32xf32>
    %c0_10 = arith.constant 0 : index
    %c0_11 = arith.constant 0 : index
    %24 = vector.load %arg3[%c0_10, %c0_11] : memref<1x32xf32, #tpu.memory_space<vmem>>, vector<1x32xf32>
    %25 = vector.broadcast %24 : vector<1x32xf32> to vector<6x32xf32>
    %26 = arith.addf %23, %25 : vector<6x32xf32>
    %cst_12 = arith.constant 0.000000e+00 : f32
    %27 = vector.broadcast %cst_12 : f32 to vector<6x32xf32>
    %28 = arith.maximumf %26, %27 : vector<6x32xf32>
    %c0_13 = arith.constant 0 : index
    %c0_14 = arith.constant 0 : index
    %29 = vector.load %arg4[%c0_13, %c0_14] : memref<6x32xf32, #tpu.memory_space<vmem>>, vector<6x32xf32>
    tpu.vector_store %arg4[%c0_13, %c0_14], %28 {strides = array<i32>} : memref<6x32xf32, #tpu.memory_space<vmem>>, vector<6x32xf32>,
    return
  }
}

module attributes {stable_mosaic.version = 11 : i64} {
  func.func @_bigru_kernel(%arg0: memref<6x32xf32, #tpu.memory_space<vmem>>, %arg1: memref<32x96xf32, #tpu.memory_space<vmem>>, %arg2: memref<1x96xf32, #tpu.memory_space<vmem>>, %arg3: memref<32x96xf32, #tpu.memory_space<vmem>>, %arg4: memref<1x96xf32, #tpu.memory_space<vmem>>, %arg5: memref<2x32xf32, #tpu.memory_space<vmem>>, %arg6: memref<6x32xf32, #tpu.memory_space<vmem>>, %arg7: memref<2x32xf32, #tpu.memory_space<vmem>>, %arg8: memref<6x96xf32, #tpu.memory_space<vmem>>) attributes {dimension_semantics = [], scalar_prefetch = 0 : i64, scratch_operands = 1 : i64, tpu.core_type = #tpu.core_type<tc>} {
    %c0 = arith.constant 0 : index
    %c0_0 = arith.constant 0 : index
    %0 = vector.load %arg0[%c0, %c0_0] : memref<6x32xf32, #tpu.memory_space<vmem>>, vector<6x32xf32>
    %c0_1 = arith.constant 0 : index
    %c0_2 = arith.constant 0 : index
    %1 = vector.load %arg1[%c0_1, %c0_2] : memref<32x96xf32, #tpu.memory_space<vmem>>, vector<32x96xf32>
    %cst = arith.constant dense<0.000000e+00> : vector<6x96xf32>
    %2 = tpu.matmul %0, %1, %cst {dimension_numbers = #tpu.dot_dimension_numbers<[1], [0], [0], [1], [0, 0, 1, 1], [], []>} : vector<6x32xf32>, vector<32x96xf32>, vector<6x96xf32> -> vector<6x96xf32>
    %c0_3 = arith.constant 0 : index
    %c0_4 = arith.constant 0 : index
    %3 = vector.load %arg2[%c0_3, %c0_4] : memref<1x96xf32, #tpu.memory_space<vmem>>, vector<1x96xf32>
    %4 = vector.broadcast %3 : vector<1x96xf32> to vector<6x96xf32>
    %5 = arith.addf %2, %4 : vector<6x96xf32>
    %c0_5 = arith.constant 0 : index
    %c0_6 = arith.constant 0 : index
    %6 = vector.load %arg8[%c0_5, %c0_6] : memref<6x96xf32, #tpu.memory_space<vmem>>, vector<6x96xf32>
    tpu.vector_store %arg8[%c0_5, %c0_6], %5 {strides = array<i32>} : memref<6x96xf32, #tpu.memory_space<vmem>>, vector<6x96xf32>,
    %c0_7 = arith.constant 0 : index
    %c0_8 = arith.constant 0 : index
    %7 = vector.load %arg5[%c0_7, %c0_8] : memref<2x32xf32, #tpu.memory_space<vmem>>, vector<2x32xf32>
    %c0_i32 = arith.constant 0 : i32
    %c0_9 = arith.constant 0 : index
    %c0_10 = arith.constant 0 : index
    %8 = vector.load %arg3[%c0_9, %c0_10] : memref<32x96xf32, #tpu.memory_space<vmem>>, vector<32x96xf32>
    %cst_11 = arith.constant dense<0.000000e+00> : vector<2x96xf32>
    %9 = tpu.matmul %7, %8, %cst_11 {dimension_numbers = #tpu.dot_dimension_numbers<[1], [0], [0], [1], [0, 0, 1, 1], [], []>} : vector<2x32xf32>, vector<32x96xf32>, vector<2x96xf32> -> vector<2x96xf32>
    %c0_12 = arith.constant 0 : index
    %c0_13 = arith.constant 0 : index
    %10 = vector.load %arg4[%c0_12, %c0_13] : memref<1x96xf32, #tpu.memory_space<vmem>>, vector<1x96xf32>
    %11 = vector.broadcast %10 : vector<1x96xf32> to vector<2x96xf32>
    %12 = arith.addf %9, %11 : vector<2x96xf32>
    %c2_i32 = arith.constant 2 : i32
    %13 = arith.muli %c0_i32, %c2_i32 : i32
    %14 = arith.index_cast %13 : i32 to index
    %c0_14 = arith.constant 0 : index
    %15 = vector.load %arg8[%14, %c0_14] : memref<6x96xf32, #tpu.memory_space<vmem>>, vector<2x48xf32>
    %c2_i32_15 = arith.constant 2 : i32
    %16 = arith.subi %c2_i32_15, %c0_i32 : i32
    %c2_i32_16 = arith.constant 2 : i32
    %17 = arith.muli %16, %c2_i32_16 : i32
    %18 = arith.index_cast %17 : i32 to index
    %c48 = arith.constant 48 : index
    %19 = vector.load %arg8[%18, %c48] : memref<6x96xf32, #tpu.memory_space<vmem>>, vector<2x48xf32>
    %20 = vector.extract_strided_slice %12 {offsets = [0, 0], sizes = [2, 48], strides = [1, 1]} : vector<2x96xf32> to vector<2x48xf32>
    %21 = vector.extract_strided_slice %12 {offsets = [0, 48], sizes = [2, 48], strides = [1, 1]} : vector<2x96xf32> to vector<2x48xf32>
    %22 = vector.extract_strided_slice %7 {offsets = [0, 0], sizes = [2, 16], strides = [1, 1]} : vector<2x32xf32> to vector<2x16xf32>
    %23 = vector.extract_strided_slice %7 {offsets = [0, 16], sizes = [2, 16], strides = [1, 1]} : vector<2x32xf32> to vector<2x16xf32>
    %24 = vector.extract_strided_slice %15 {offsets = [0, 0], sizes = [2, 16], strides = [1, 1]} : vector<2x48xf32> to vector<2x16xf32>
    %25 = vector.extract_strided_slice %20 {offsets = [0, 0], sizes = [2, 16], strides = [1, 1]} : vector<2x48xf32> to vector<2x16xf32>
    %26 = arith.addf %24, %25 : vector<2x16xf32>
    %27 = arith.negf %26 : vector<2x16xf32>
    %28 = math.exp %27 : vector<2x16xf32>
    %cst_17 = arith.constant 1.000000e+00 : f32
    %29 = vector.broadcast %cst_17 : f32 to vector<2x16xf32>
    %30 = arith.addf %29, %28 : vector<2x16xf32>
    %31 = arith.divf %29, %30 : vector<2x16xf32>
    %32 = vector.extract_strided_slice %15 {offsets = [0, 16], sizes = [2, 16], strides = [1, 1]} : vector<2x48xf32> to vector<2x16xf32>
    %33 = vector.extract_strided_slice %20 {offsets = [0, 16], sizes = [2, 16], strides = [1, 1]} : vector<2x48xf32> to vector<2x16xf32>
    %34 = arith.addf %32, %33 : vector<2x16xf32>
    %35 = arith.negf %34 : vector<2x16xf32>
    %36 = math.exp %35 : vector<2x16xf32>
    %cst_18 = arith.constant 1.000000e+00 : f32
    %37 = vector.broadcast %cst_18 : f32 to vector<2x16xf32>
    %38 = arith.addf %37, %36 : vector<2x16xf32>
    %39 = arith.divf %37, %38 : vector<2x16xf32>
    %40 = vector.extract_strided_slice %15 {offsets = [0, 32], sizes = [2, 16], strides = [1, 1]} : vector<2x48xf32> to vector<2x16xf32>
    %41 = vector.extract_strided_slice %20 {offsets = [0, 32], sizes = [2, 16], strides = [1, 1]} : vector<2x48xf32> to vector<2x16xf32>
    %42 = arith.mulf %31, %41 : vector<2x16xf32>
    %43 = arith.addf %40, %42 : vector<2x16xf32>
    %44 = math.tanh %43 : vector<2x16xf32>
    %cst_19 = arith.constant 1.000000e+00 : f32
    %45 = vector.broadcast %cst_19 : f32 to vector<2x16xf32>
    %46 = arith.subf %45, %39 : vector<2x16xf32>
    %47 = arith.mulf %46, %44 : vector<2x16xf32>
    %48 = arith.mulf %39, %22 : vector<2x16xf32>
    %49 = arith.addf %47, %48 : vector<2x16xf32>
    %50 = vector.extract_strided_slice %19 {offsets = [0, 0], sizes = [2, 16], strides = [1, 1]} : vector<2x48xf32> to vector<2x16xf32>
    %51 = vector.extract_strided_slice %21 {offsets = [0, 0], sizes = [2, 16], strides = [1, 1]} : vector<2x48xf32> to vector<2x16xf32>
    %52 = arith.addf %50, %51 : vector<2x16xf32>
    %53 = arith.negf %52 : vector<2x16xf32>
    %54 = math.exp %53 : vector<2x16xf32>
    %cst_20 = arith.constant 1.000000e+00 : f32
    %55 = vector.broadcast %cst_20 : f32 to vector<2x16xf32>
    %56 = arith.addf %55, %54 : vector<2x16xf32>
    %57 = arith.divf %55, %56 : vector<2x16xf32>
    %58 = vector.extract_strided_slice %19 {offsets = [0, 16], sizes = [2, 16], strides = [1, 1]} : vector<2x48xf32> to vector<2x16xf32>
    %59 = vector.extract_strided_slice %21 {offsets = [0, 16], sizes = [2, 16], strides = [1, 1]} : vector<2x48xf32> to vector<2x16xf32>
    %60 = arith.addf %58, %59 : vector<2x16xf32>
    %61 = arith.negf %60 : vector<2x16xf32>
    %62 = math.exp %61 : vector<2x16xf32>
    %cst_21 = arith.constant 1.000000e+00 : f32
    %63 = vector.broadcast %cst_21 : f32 to vector<2x16xf32>
    %64 = arith.addf %63, %62 : vector<2x16xf32>
    %65 = arith.divf %63, %64 : vector<2x16xf32>
    %66 = vector.extract_strided_slice %19 {offsets = [0, 32], sizes = [2, 16], strides = [1, 1]} : vector<2x48xf32> to vector<2x16xf32>
    %67 = vector.extract_strided_slice %21 {offsets = [0, 32], sizes = [2, 16], strides = [1, 1]} : vector<2x48xf32> to vector<2x16xf32>
    %68 = arith.mulf %57, %67 : vector<2x16xf32>
    %69 = arith.addf %66, %68 : vector<2x16xf32>
    %70 = math.tanh %69 : vector<2x16xf32>
    %cst_22 = arith.constant 1.000000e+00 : f32
    %71 = vector.broadcast %cst_22 : f32 to vector<2x16xf32>
    %72 = arith.subf %71, %65 : vector<2x16xf32>
    %73 = arith.mulf %72, %70 : vector<2x16xf32>
    %74 = arith.mulf %65, %23 : vector<2x16xf32>
    %75 = arith.addf %73, %74 : vector<2x16xf32>
    %c2_i32_23 = arith.constant 2 : i32
    %76 = arith.muli %c0_i32, %c2_i32_23 : i32
    %77 = arith.index_cast %76 : i32 to index
    %c0_24 = arith.constant 0 : index
    %78 = vector.load %arg6[%77, %c0_24] : memref<6x32xf32, #tpu.memory_space<vmem>>, vector<2x16xf32>
    tpu.vector_store %arg6[%77, %c0_24], %49 {strides = array<i32>} : memref<6x32xf32, #tpu.memory_space<vmem>>, vector<2x16xf32>,
    %c2_i32_25 = arith.constant 2 : i32
    %79 = arith.subi %c2_i32_25, %c0_i32 : i32
    %c2_i32_26 = arith.constant 2 : i32
    %80 = arith.muli %79, %c2_i32_26 : i32
    %81 = arith.index_cast %80 : i32 to index
    %c16 = arith.constant 16 : index
    %82 = vector.load %arg6[%81, %c16] : memref<6x32xf32, #tpu.memory_space<vmem>>, vector<2x16xf32>
    tpu.vector_store %arg6[%81, %c16], %75 {strides = array<i32>} : memref<6x32xf32, #tpu.memory_space<vmem>>, vector<2x16xf32>,
    %83 = tpu.concatenate %49, %75 in 1 : vector<2x16xf32>, vector<2x16xf32> -> vector<2x32xf32>
    %c1_i32 = arith.constant 1 : i32
    %c0_27 = arith.constant 0 : index
    %c0_28 = arith.constant 0 : index
    %84 = vector.load %arg3[%c0_27, %c0_28] : memref<32x96xf32, #tpu.memory_space<vmem>>, vector<32x96xf32>
    %cst_29 = arith.constant dense<0.000000e+00> : vector<2x96xf32>
    %85 = tpu.matmul %83, %84, %cst_29 {dimension_numbers = #tpu.dot_dimension_numbers<[1], [0], [0], [1], [0, 0, 1, 1], [], []>} : vector<2x32xf32>, vector<32x96xf32>, vector<2x96xf32> -> vector<2x96xf32>
    %c0_30 = arith.constant 0 : index
    %c0_31 = arith.constant 0 : index
    %86 = vector.load %arg4[%c0_30, %c0_31] : memref<1x96xf32, #tpu.memory_space<vmem>>, vector<1x96xf32>
    %87 = vector.broadcast %86 : vector<1x96xf32> to vector<2x96xf32>
    %88 = arith.addf %85, %87 : vector<2x96xf32>
    %c2_i32_32 = arith.constant 2 : i32
    %89 = arith.muli %c1_i32, %c2_i32_32 : i32
    %90 = arith.index_cast %89 : i32 to index
    %c0_33 = arith.constant 0 : index
    %91 = vector.load %arg8[%90, %c0_33] : memref<6x96xf32, #tpu.memory_space<vmem>>, vector<2x48xf32>
    %c2_i32_34 = arith.constant 2 : i32
    %92 = arith.subi %c2_i32_34, %c1_i32 : i32
    %c2_i32_35 = arith.constant 2 : i32
    %93 = arith.muli %92, %c2_i32_35 : i32
    %94 = arith.index_cast %93 : i32 to index
    %c48_36 = arith.constant 48 : index
    %95 = vector.load %arg8[%94, %c48_36] : memref<6x96xf32, #tpu.memory_space<vmem>>, vector<2x48xf32>
    %96 = vector.extract_strided_slice %88 {offsets = [0, 0], sizes = [2, 48], strides = [1, 1]} : vector<2x96xf32> to vector<2x48xf32>
    %97 = vector.extract_strided_slice %88 {offsets = [0, 48], sizes = [2, 48], strides = [1, 1]} : vector<2x96xf32> to vector<2x48xf32>
    %98 = vector.extract_strided_slice %83 {offsets = [0, 0], sizes = [2, 16], strides = [1, 1]} : vector<2x32xf32> to vector<2x16xf32>
    %99 = vector.extract_strided_slice %83 {offsets = [0, 16], sizes = [2, 16], strides = [1, 1]} : vector<2x32xf32> to vector<2x16xf32>
    %100 = vector.extract_strided_slice %91 {offsets = [0, 0], sizes = [2, 16], strides = [1, 1]} : vector<2x48xf32> to vector<2x16xf32>
    %101 = vector.extract_strided_slice %96 {offsets = [0, 0], sizes = [2, 16], strides = [1, 1]} : vector<2x48xf32> to vector<2x16xf32>
    %102 = arith.addf %100, %101 : vector<2x16xf32>
    %103 = arith.negf %102 : vector<2x16xf32>
    %104 = math.exp %103 : vector<2x16xf32>
    %cst_37 = arith.constant 1.000000e+00 : f32
    %105 = vector.broadcast %cst_37 : f32 to vector<2x16xf32>
    %106 = arith.addf %105, %104 : vector<2x16xf32>
    %107 = arith.divf %105, %106 : vector<2x16xf32>
    %108 = vector.extract_strided_slice %91 {offsets = [0, 16], sizes = [2, 16], strides = [1, 1]} : vector<2x48xf32> to vector<2x16xf32>
    %109 = vector.extract_strided_slice %96 {offsets = [0, 16], sizes = [2, 16], strides = [1, 1]} : vector<2x48xf32> to vector<2x16xf32>
    %110 = arith.addf %108, %109 : vector<2x16xf32>
    %111 = arith.negf %110 : vector<2x16xf32>
    %112 = math.exp %111 : vector<2x16xf32>
    %cst_38 = arith.constant 1.000000e+00 : f32
    %113 = vector.broadcast %cst_38 : f32 to vector<2x16xf32>
    %114 = arith.addf %113, %112 : vector<2x16xf32>
    %115 = arith.divf %113, %114 : vector<2x16xf32>
    %116 = vector.extract_strided_slice %91 {offsets = [0, 32], sizes = [2, 16], strides = [1, 1]} : vector<2x48xf32> to vector<2x16xf32>
    %117 = vector.extract_strided_slice %96 {offsets = [0, 32], sizes = [2, 16], strides = [1, 1]} : vector<2x48xf32> to vector<2x16xf32>
    %118 = arith.mulf %107, %117 : vector<2x16xf32>
    %119 = arith.addf %116, %118 : vector<2x16xf32>
    %120 = math.tanh %119 : vector<2x16xf32>
    %cst_39 = arith.constant 1.000000e+00 : f32
    %121 = vector.broadcast %cst_39 : f32 to vector<2x16xf32>
    %122 = arith.subf %121, %115 : vector<2x16xf32>
    %123 = arith.mulf %122, %120 : vector<2x16xf32>
    %124 = arith.mulf %115, %98 : vector<2x16xf32>
    %125 = arith.addf %123, %124 : vector<2x16xf32>
    %126 = vector.extract_strided_slice %95 {offsets = [0, 0], sizes = [2, 16], strides = [1, 1]} : vector<2x48xf32> to vector<2x16xf32>
    %127 = vector.extract_strided_slice %97 {offsets = [0, 0], sizes = [2, 16], strides = [1, 1]} : vector<2x48xf32> to vector<2x16xf32>
    %128 = arith.addf %126, %127 : vector<2x16xf32>
    %129 = arith.negf %128 : vector<2x16xf32>
    %130 = math.exp %129 : vector<2x16xf32>
    %cst_40 = arith.constant 1.000000e+00 : f32
    %131 = vector.broadcast %cst_40 : f32 to vector<2x16xf32>
    %132 = arith.addf %131, %130 : vector<2x16xf32>
    %133 = arith.divf %131, %132 : vector<2x16xf32>
    %134 = vector.extract_strided_slice %95 {offsets = [0, 16], sizes = [2, 16], strides = [1, 1]} : vector<2x48xf32> to vector<2x16xf32>
    %135 = vector.extract_strided_slice %97 {offsets = [0, 16], sizes = [2, 16], strides = [1, 1]} : vector<2x48xf32> to vector<2x16xf32>
    %136 = arith.addf %134, %135 : vector<2x16xf32>
    %137 = arith.negf %136 : vector<2x16xf32>
    %138 = math.exp %137 : vector<2x16xf32>
    %cst_41 = arith.constant 1.000000e+00 : f32
    %139 = vector.broadcast %cst_41 : f32 to vector<2x16xf32>
    %140 = arith.addf %139, %138 : vector<2x16xf32>
    %141 = arith.divf %139, %140 : vector<2x16xf32>
    %142 = vector.extract_strided_slice %95 {offsets = [0, 32], sizes = [2, 16], strides = [1, 1]} : vector<2x48xf32> to vector<2x16xf32>
    %143 = vector.extract_strided_slice %97 {offsets = [0, 32], sizes = [2, 16], strides = [1, 1]} : vector<2x48xf32> to vector<2x16xf32>
    %144 = arith.mulf %133, %143 : vector<2x16xf32>
    %145 = arith.addf %142, %144 : vector<2x16xf32>
    %146 = math.tanh %145 : vector<2x16xf32>
    %cst_42 = arith.constant 1.000000e+00 : f32
    %147 = vector.broadcast %cst_42 : f32 to vector<2x16xf32>
    %148 = arith.subf %147, %141 : vector<2x16xf32>
    %149 = arith.mulf %148, %146 : vector<2x16xf32>
    %150 = arith.mulf %141, %99 : vector<2x16xf32>
    %151 = arith.addf %149, %150 : vector<2x16xf32>
    %c2_i32_43 = arith.constant 2 : i32
    %152 = arith.muli %c1_i32, %c2_i32_43 : i32
    %153 = arith.index_cast %152 : i32 to index
    %c0_44 = arith.constant 0 : index
    %154 = vector.load %arg6[%153, %c0_44] : memref<6x32xf32, #tpu.memory_space<vmem>>, vector<2x16xf32>
    tpu.vector_store %arg6[%153, %c0_44], %125 {strides = array<i32>} : memref<6x32xf32, #tpu.memory_space<vmem>>, vector<2x16xf32>,
    %c2_i32_45 = arith.constant 2 : i32
    %155 = arith.subi %c2_i32_45, %c1_i32 : i32
    %c2_i32_46 = arith.constant 2 : i32
    %156 = arith.muli %155, %c2_i32_46 : i32
    %157 = arith.index_cast %156 : i32 to index
    %c16_47 = arith.constant 16 : index
    %158 = vector.load %arg6[%157, %c16_47] : memref<6x32xf32, #tpu.memory_space<vmem>>, vector<2x16xf32>
    tpu.vector_store %arg6[%157, %c16_47], %151 {strides = array<i32>} : memref<6x32xf32, #tpu.memory_space<vmem>>, vector<2x16xf32>,
    %159 = tpu.concatenate %125, %151 in 1 : vector<2x16xf32>, vector<2x16xf32> -> vector<2x32xf32>
    %c2_i32_48 = arith.constant 2 : i32
    %c0_49 = arith.constant 0 : index
    %c0_50 = arith.constant 0 : index
    %160 = vector.load %arg3[%c0_49, %c0_50] : memref<32x96xf32, #tpu.memory_space<vmem>>, vector<32x96xf32>
    %cst_51 = arith.constant dense<0.000000e+00> : vector<2x96xf32>
    %161 = tpu.matmul %159, %160, %cst_51 {dimension_numbers = #tpu.dot_dimension_numbers<[1], [0], [0], [1], [0, 0, 1, 1], [], []>} : vector<2x32xf32>, vector<32x96xf32>, vector<2x96xf32> -> vector<2x96xf32>
    %c0_52 = arith.constant 0 : index
    %c0_53 = arith.constant 0 : index
    %162 = vector.load %arg4[%c0_52, %c0_53] : memref<1x96xf32, #tpu.memory_space<vmem>>, vector<1x96xf32>
    %163 = vector.broadcast %162 : vector<1x96xf32> to vector<2x96xf32>
    %164 = arith.addf %161, %163 : vector<2x96xf32>
    %c2_i32_54 = arith.constant 2 : i32
    %165 = arith.muli %c2_i32_48, %c2_i32_54 : i32
    %166 = arith.index_cast %165 : i32 to index
    %c0_55 = arith.constant 0 : index
    %167 = vector.load %arg8[%166, %c0_55] : memref<6x96xf32, #tpu.memory_space<vmem>>, vector<2x48xf32>
    %c2_i32_56 = arith.constant 2 : i32
    %168 = arith.subi %c2_i32_56, %c2_i32_48 : i32
    %c2_i32_57 = arith.constant 2 : i32
    %169 = arith.muli %168, %c2_i32_57 : i32
    %170 = arith.index_cast %169 : i32 to index
    %c48_58 = arith.constant 48 : index
    %171 = vector.load %arg8[%170, %c48_58] : memref<6x96xf32, #tpu.memory_space<vmem>>, vector<2x48xf32>
    %172 = vector.extract_strided_slice %164 {offsets = [0, 0], sizes = [2, 48], strides = [1, 1]} : vector<2x96xf32> to vector<2x48xf32>
    %173 = vector.extract_strided_slice %164 {offsets = [0, 48], sizes = [2, 48], strides = [1, 1]} : vector<2x96xf32> to vector<2x48xf32>
    %174 = vector.extract_strided_slice %159 {offsets = [0, 0], sizes = [2, 16], strides = [1, 1]} : vector<2x32xf32> to vector<2x16xf32>
    %175 = vector.extract_strided_slice %159 {offsets = [0, 16], sizes = [2, 16], strides = [1, 1]} : vector<2x32xf32> to vector<2x16xf32>
    %176 = vector.extract_strided_slice %167 {offsets = [0, 0], sizes = [2, 16], strides = [1, 1]} : vector<2x48xf32> to vector<2x16xf32>
    %177 = vector.extract_strided_slice %172 {offsets = [0, 0], sizes = [2, 16], strides = [1, 1]} : vector<2x48xf32> to vector<2x16xf32>
    %178 = arith.addf %176, %177 : vector<2x16xf32>
    %179 = arith.negf %178 : vector<2x16xf32>
    %180 = math.exp %179 : vector<2x16xf32>
    %cst_59 = arith.constant 1.000000e+00 : f32
    %181 = vector.broadcast %cst_59 : f32 to vector<2x16xf32>
    %182 = arith.addf %181, %180 : vector<2x16xf32>
    %183 = arith.divf %181, %182 : vector<2x16xf32>
    %184 = vector.extract_strided_slice %167 {offsets = [0, 16], sizes = [2, 16], strides = [1, 1]} : vector<2x48xf32> to vector<2x16xf32>
    %185 = vector.extract_strided_slice %172 {offsets = [0, 16], sizes = [2, 16], strides = [1, 1]} : vector<2x48xf32> to vector<2x16xf32>
    %186 = arith.addf %184, %185 : vector<2x16xf32>
    %187 = arith.negf %186 : vector<2x16xf32>
    %188 = math.exp %187 : vector<2x16xf32>
    %cst_60 = arith.constant 1.000000e+00 : f32
    %189 = vector.broadcast %cst_60 : f32 to vector<2x16xf32>
    %190 = arith.addf %189, %188 : vector<2x16xf32>
    %191 = arith.divf %189, %190 : vector<2x16xf32>
    %192 = vector.extract_strided_slice %167 {offsets = [0, 32], sizes = [2, 16], strides = [1, 1]} : vector<2x48xf32> to vector<2x16xf32>
    %193 = vector.extract_strided_slice %172 {offsets = [0, 32], sizes = [2, 16], strides = [1, 1]} : vector<2x48xf32> to vector<2x16xf32>
    %194 = arith.mulf %183, %193 : vector<2x16xf32>
    %195 = arith.addf %192, %194 : vector<2x16xf32>
    %196 = math.tanh %195 : vector<2x16xf32>
    %cst_61 = arith.constant 1.000000e+00 : f32
    %197 = vector.broadcast %cst_61 : f32 to vector<2x16xf32>
    %198 = arith.subf %197, %191 : vector<2x16xf32>
    %199 = arith.mulf %198, %196 : vector<2x16xf32>
    %200 = arith.mulf %191, %174 : vector<2x16xf32>
    %201 = arith.addf %199, %200 : vector<2x16xf32>
    %202 = vector.extract_strided_slice %171 {offsets = [0, 0], sizes = [2, 16], strides = [1, 1]} : vector<2x48xf32> to vector<2x16xf32>
    %203 = vector.extract_strided_slice %173 {offsets = [0, 0], sizes = [2, 16], strides = [1, 1]} : vector<2x48xf32> to vector<2x16xf32>
    %204 = arith.addf %202, %203 : vector<2x16xf32>
    %205 = arith.negf %204 : vector<2x16xf32>
    %206 = math.exp %205 : vector<2x16xf32>
    %cst_62 = arith.constant 1.000000e+00 : f32
    %207 = vector.broadcast %cst_62 : f32 to vector<2x16xf32>
    %208 = arith.addf %207, %206 : vector<2x16xf32>
    %209 = arith.divf %207, %208 : vector<2x16xf32>
    %210 = vector.extract_strided_slice %171 {offsets = [0, 16], sizes = [2, 16], strides = [1, 1]} : vector<2x48xf32> to vector<2x16xf32>
    %211 = vector.extract_strided_slice %173 {offsets = [0, 16], sizes = [2, 16], strides = [1, 1]} : vector<2x48xf32> to vector<2x16xf32>
    %212 = arith.addf %210, %211 : vector<2x16xf32>
    %213 = arith.negf %212 : vector<2x16xf32>
    %214 = math.exp %213 : vector<2x16xf32>
    %cst_63 = arith.constant 1.000000e+00 : f32
    %215 = vector.broadcast %cst_63 : f32 to vector<2x16xf32>
    %216 = arith.addf %215, %214 : vector<2x16xf32>
    %217 = arith.divf %215, %216 : vector<2x16xf32>
    %218 = vector.extract_strided_slice %171 {offsets = [0, 32], sizes = [2, 16], strides = [1, 1]} : vector<2x48xf32> to vector<2x16xf32>
    %219 = vector.extract_strided_slice %173 {offsets = [0, 32], sizes = [2, 16], strides = [1, 1]} : vector<2x48xf32> to vector<2x16xf32>
    %220 = arith.mulf %209, %219 : vector<2x16xf32>
    %221 = arith.addf %218, %220 : vector<2x16xf32>
    %222 = math.tanh %221 : vector<2x16xf32>
    %cst_64 = arith.constant 1.000000e+00 : f32
    %223 = vector.broadcast %cst_64 : f32 to vector<2x16xf32>
    %224 = arith.subf %223, %217 : vector<2x16xf32>
    %225 = arith.mulf %224, %222 : vector<2x16xf32>
    %226 = arith.mulf %217, %175 : vector<2x16xf32>
    %227 = arith.addf %225, %226 : vector<2x16xf32>
    %c2_i32_65 = arith.constant 2 : i32
    %228 = arith.muli %c2_i32_48, %c2_i32_65 : i32
    %229 = arith.index_cast %228 : i32 to index
    %c0_66 = arith.constant 0 : index
    %230 = vector.load %arg6[%229, %c0_66] : memref<6x32xf32, #tpu.memory_space<vmem>>, vector<2x16xf32>
    tpu.vector_store %arg6[%229, %c0_66], %201 {strides = array<i32>} : memref<6x32xf32, #tpu.memory_space<vmem>>, vector<2x16xf32>,
    %c2_i32_67 = arith.constant 2 : i32
    %231 = arith.subi %c2_i32_67, %c2_i32_48 : i32
    %c2_i32_68 = arith.constant 2 : i32
    %232 = arith.muli %231, %c2_i32_68 : i32
    %233 = arith.index_cast %232 : i32 to index
    %c16_69 = arith.constant 16 : index
    %234 = vector.load %arg6[%233, %c16_69] : memref<6x32xf32, #tpu.memory_space<vmem>>, vector<2x16xf32>
    tpu.vector_store %arg6[%233, %c16_69], %227 {strides = array<i32>} : memref<6x32xf32, #tpu.memory_space<vmem>>, vector<2x16xf32>,
    %235 = tpu.concatenate %201, %227 in 1 : vector<2x16xf32>, vector<2x16xf32> -> vector<2x32xf32>
    %c3_i32 = arith.constant 3 : i32
    %c0_70 = arith.constant 0 : index
    %c0_71 = arith.constant 0 : index
    %236 = vector.load %arg7[%c0_70, %c0_71] : memref<2x32xf32, #tpu.memory_space<vmem>>, vector<2x32xf32>
    tpu.vector_store %arg7[%c0_70, %c0_71], %235 {strides = array<i32>} : memref<2x32xf32, #tpu.memory_space<vmem>>, vector<2x32xf32>,
    return
  }
}

</mosaic_0001>

<bundles_post_ra>
// kernel: encoder_forward.4
= control target key start
LH: loop header
LB: loop body
LE: loop exit
PB: predicated region body
PF: predicated region fallthrough
CT: control target
= control target key end

     0   :  { %vm58_vm0 = vcmask 293888   ;;  %vm167_vm1 = vcmask 1043456   ;;  %vm416_vm2 = vcmask 261120   ;;  %s1730_s1 = inlined_call_operand.vmem [shape: f32[36,32], index: 1, kind: input, shape index: {}]   ;;  %s1731_s0 = inlined_call_operand.vmem [shape: f32[288,36], index: 0, kind: input, shape index: {}]   ;;  %s1732_s2 = inlined_call_operand.vmem [shape: f32[1,32], index: 2, kind: input, shape index: {}]   ;;  %s1733_s3 = inlined_call_operand.vmem [shape: f32[1,32], index: 3, kind: input, shape index: {}]   ;;  %s1734_s4 = inlined_call_operand.vmem [shape: f32[288,32], index: 4, kind: output, shape index: {}]  }
   0x1   :  { %v53_v0 = vld [vmem:[%s1730_s1] sm:$0xff]  ;;  %v54_v1 = vld [vmem:[%s1730_s1 + $0x8] sm:$0xff]  ;;  %v55_v2 = vld [vmem:[%s1730_s1 + $0x10] sm:$0xff] }
   0x2   :  { %v992_v3 = vpack.c.bf16 %v54_v1, %v53_v0  ;;  %v56_v4 = vld [vmem:[%s1730_s1 + $0x18] sm:$0xff]  ;;  %v17_v5 = vld [vmem:[%s1731_s0] sm:$0xff]  ;;  %v35_v8 = vld [vmem:[%s1731_s0 + $0x90] sm:$0xff] }
   0x3   :  { %v996_v6 = vpack.c.bf16 %v56_v4, %v55_v2  ;;  %938 = vmatprep.mubr.msk.f32.mxu0 %vm58_vm0, %v17_v5  ;;  %v57_v7 = vld [vmem:[%s1730_s1 + $0x20] sm:$0xf]  ;;  %v18_v9 = vld [vmem:[%s1731_s0 + $0x8] sm:$0xff]  ;;  %965 = vmatprep.mubr.msk.f32.mxu1 %vm58_vm0, %v35_v8  ;;  %v36_v10 = vld [vmem:[%s1731_s0 + $0x98] sm:$0xff] }
   0x4   :  { %993 = vmatprep.subr.bf16.mxu0 %v992_v3  ;;  %1000 = vmatprep.subr.bf16.mxu1 %v992_v3  ;;  %v19_v11 = vld [vmem:[%s1731_s0 + $0x10] sm:$0xff]  ;;  %v37_v12 = vld [vmem:[%s1731_s0 + $0xa0] sm:$0xff]  ;;  %v20_v13 = vld [vmem:[%s1731_s0 + $0x18] sm:$0xff] }
   0x5   :  { %995 = vmatpush3.bf16.msra.mxu0 %v992_v3  ;;  %1003 = vmatpush3.bf16.msra.mxu1 %v992_v3  ;;  %v38_v14 = vld [vmem:[%s1731_s0 + $0xa8] sm:$0xff]  ;;  %v21_v15 = vld [vmem:[%s1731_s0 + $0x20] sm:$0xff]  ;;  %v39_v16 = vld [vmem:[%s1731_s0 + $0xb0] sm:$0xff] }
   0x6   :  { %997 = vmatprep.subr.bf16.mxu0 %v996_v6  ;;  %1001 = vmatprep.subr.bf16.mxu1 %v996_v6  ;;  %v22_v17 = vld [vmem:[%s1731_s0 + $0x28] sm:$0xff]  ;;  %v40_v18 = vld [vmem:[%s1731_s0 + $0xb8] sm:$0xff]  ;;  %v23_v19 = vld [vmem:[%s1731_s0 + $0x30] sm:$0xff] }
   0x7   :  { %v41_v20 = vld [vmem:[%s1731_s0 + $0xc0] sm:$0xff]  ;;  %v24_v21 = vld [vmem:[%s1731_s0 + $0x38] sm:$0xff]  ;;  %v42_v22 = vld [vmem:[%s1731_s0 + $0xc8] sm:$0xff] }
   0x8   :  { %v25_v23 = vld [vmem:[%s1731_s0 + $0x40] sm:$0xff]  ;;  %v43_v24 = vld [vmem:[%s1731_s0 + $0xd0] sm:$0xff]  ;;  %v26_v25 = vld [vmem:[%s1731_s0 + $0x48] sm:$0xff] }
   0x9   :  { %999 = vmatpush3.bf16.msra.mxu0 %v996_v6  ;;  %1004 = vmatpush3.bf16.msra.mxu1 %v996_v6  ;;  %v44_v26 = vld [vmem:[%s1731_s0 + $0xd8] sm:$0xff]  ;;  %v27_v27 = vld [vmem:[%s1731_s0 + $0x50] sm:$0xff]  ;;  %v45_v28 = vld [vmem:[%s1731_s0 + $0xe0] sm:$0xff] }
   0xa   :  { %936 = vmatprep.subr.msk.mxu0 %vm167_vm1, %v57_v7  ;;  %1002 = vmatprep.subr.msk.mxu1 %vm167_vm1, %v57_v7  ;;  %v28_v29 = vld [vmem:[%s1731_s0 + $0x58] sm:$0xff]  ;;  %v46_v30 = vld [vmem:[%s1731_s0 + $0xe8] sm:$0xff]  ;;  %v29_v31 = vld [vmem:[%s1731_s0 + $0x60] sm:$0xff] }
   0xb   :  { %v47_v32 = vld [vmem:[%s1731_s0 + $0xf0] sm:$0xff]  ;;  %v30_v33 = vld [vmem:[%s1731_s0 + $0x68] sm:$0xff]  ;;  %v48_v34 = vld [vmem:[%s1731_s0 + $0xf8] sm:$0xff] }
   0xc   :  { %v31_v35 = vld [vmem:[%s1731_s0 + $0x70] sm:$0xff]  ;;  %v49_v36 = vld [vmem:[%s1731_s0 + $0x100] sm:$0xff]  ;;  %v32_v37 = vld [vmem:[%s1731_s0 + $0x78] sm:$0xff] }
   0xd   :  { %937 = vmatpush3.msk.msra.mxu0 %vm167_vm1, %v57_v7  ;;  %1005 = vmatpush3.msk.msra.mxu1 %vm167_vm1, %v57_v7  ;;  %v50_v38 = vld [vmem:[%s1731_s0 + $0x108] sm:$0xff]  ;;  %v33_v39 = vld [vmem:[%s1731_s0 + $0x80] sm:$0xff]  ;;  %v51_v40 = vld [vmem:[%s1731_s0 + $0x110] sm:$0xff] }
   0xe   :  { %939 = vmatmul.mubr.msk.f32.vlgmr.msra.gmra.mrb[0].mxu0 %vm58_vm0, %v18_v9  ;;  %966 = vmatmul.mubr.msk.f32.vlgmr.msra.gmra.mrb[0].mxu1 %vm58_vm0, %v36_v10  ;;  %v34_v41 = vld [vmem:[%s1731_s0 + $0x88] sm:$0xff]  ;;  %v52_v42 = vld [vmem:[%s1731_s0 + $0x118] sm:$0xff] }
   0xf   :  { %941 = vmatprep.mubr.msk.f32.mxu0 %vm58_vm0, %v19_v11  ;;  %968 = vmatprep.mubr.msk.f32.mxu1 %vm58_vm0, %v37_v12 }
  0x12   :  { %942 = vmatmul.mubr.msk.f32.gmra.mrb[2].mxu0 %vm58_vm0, %v20_v13  ;;  %969 = vmatmul.mubr.msk.f32.gmra.mrb[2].mxu1 %vm58_vm0, %v38_v14 }
  0x13   :  { %944 = vmatprep.mubr.msk.f32.mxu0 %vm58_vm0, %v21_v15  ;;  %971 = vmatprep.mubr.msk.f32.mxu1 %vm58_vm0, %v39_v16 }
  0x16   :  { %945 = vmatmul.mubr.msk.f32.gmra.mrb[4].mxu0 %vm58_vm0, %v22_v17  ;;  %972 = vmatmul.mubr.msk.f32.gmra.mrb[4].mxu1 %vm58_vm0, %v40_v18 }
  0x17   :  { %947 = vmatprep.mubr.msk.f32.mxu0 %vm58_vm0, %v23_v19  ;;  %974 = vmatprep.mubr.msk.f32.mxu1 %vm58_vm0, %v41_v20 }
  0x1a   :  { %948 = vmatmul.mubr.msk.f32.gmra.mrb[6].mxu0 %vm58_vm0, %v24_v21  ;;  %975 = vmatmul.mubr.msk.f32.gmra.mrb[6].mxu1 %vm58_vm0, %v42_v22 }
  0x1b   :  { %950 = vmatprep.mubr.msk.f32.mxu0 %vm58_vm0, %v25_v23  ;;  %977 = vmatprep.mubr.msk.f32.mxu1 %vm58_vm0, %v43_v24 }
  0x1e   :  { %951 = vmatmul.mubr.msk.f32.gmra.mrb[8].mxu0 %vm58_vm0, %v26_v25  ;;  %978 = vmatmul.mubr.msk.f32.gmra.mrb[8].mxu1 %vm58_vm0, %v44_v26 }
  0x1f   :  { %953 = vmatprep.mubr.msk.f32.mxu0 %vm58_vm0, %v27_v27  ;;  %980 = vmatprep.mubr.msk.f32.mxu1 %vm58_vm0, %v45_v28 }
  0x22   :  { %954 = vmatmul.mubr.msk.f32.gmra.mrb[10].mxu0 %vm58_vm0, %v28_v29  ;;  %981 = vmatmul.mubr.msk.f32.gmra.mrb[10].mxu1 %vm58_vm0, %v46_v30 }
  0x23   :  { %956 = vmatprep.mubr.msk.f32.mxu0 %vm58_vm0, %v29_v31  ;;  %983 = vmatprep.mubr.msk.f32.mxu1 %vm58_vm0, %v47_v32 }
  0x26   :  { %957 = vmatmul.mubr.msk.f32.gmra.mrb[12].mxu0 %vm58_vm0, %v30_v33  ;;  %984 = vmatmul.mubr.msk.f32.gmra.mrb[12].mxu1 %vm58_vm0, %v48_v34 }
  0x27   :  { %959 = vmatprep.mubr.msk.f32.mxu0 %vm58_vm0, %v31_v35  ;;  %986 = vmatprep.mubr.msk.f32.mxu1 %vm58_vm0, %v49_v36 }
  0x2a   :  { %960 = vmatmul.mubr.msk.f32.gmra.mrb[14].mxu0 %vm58_vm0, %v32_v37  ;;  %987 = vmatmul.mubr.msk.f32.gmra.mrb[14].mxu1 %vm58_vm0, %v50_v38 }
  0x2b   :  { %962 = vmatprep.mubr.msk.f32.mxu0 %vm58_vm0, %v33_v39  ;;  %989 = vmatprep.mubr.msk.f32.mxu1 %vm58_vm0, %v51_v40 }
  0x2e   :  { %963 = vmatmul.mubr.msk.f32.gmra.mrb[16].mxu0 %vm58_vm0, %v34_v41  ;;  %990 = vmatmul.mubr.msk.f32.gmra.mrb[16].mxu1 %vm58_vm0, %v52_v42 }
  0xe1   :  { %v1192_v43 = vpop.f32.mrb[0].mxu0  ;;  %v1194_v44 = vpop.f32.mrb[0].mxu1 }
  0xe2   :  { %v418_v45 = vsel %vm416_vm2, %v1192_v43, 0.0  ;;  %v497_v46 = vmul.f32 %v1192_v43, %v1192_v43  ;;  %v1200_v47 = vpop.f32.mrb[1].mxu0  ;;  %v1202_v48 = vpop.f32.mrb[1].mxu1 }
  0xe3   :  { %v417_v49 = vsel %vm416_vm2, %v1200_v47, 0.0  ;;  %v496_v50 = vmul.f32 %v1200_v47, %v1200_v47 }
  0xe4   :  { %v533_v51 = vsel %vm416_vm2, %v497_v46, 0.0  ;;  %v419_v52 = vadd.f32 %v418_v45, %v417_v49 }
  0xe5   :  { %v532_v53 = vsel %vm416_vm2, %v496_v50, 0.0  ;;  %v1210_v54 = vpop.f32.mrb[2].mxu0  ;;  %v1212_v55 = vpop.f32.mrb[2].mxu1 }
  0xe6   :  { %v534_v56 = vadd.f32 %v533_v51, %v532_v53  ;;  %v1214_v57 = vpop.f32.mrb[3].mxu0  ;;  %v1216_v58 = vpop.f32.mrb[3].mxu1  ;;  %v499_v59 = vmul.f32 %v1210_v54, %v1210_v54  ;;  %v422_v63 = vsel %vm416_vm2, %v1210_v54, 0.0 }
  0xe7   :  { %v420_v60 = vsel %vm416_vm2, %v1214_v57, 0.0  ;;  %v498_v61 = vmul.f32 %v1214_v57, %v1214_v57 }
  0xe8   :  { %v421_v62 = vadd.f32 %v420_v60, %v419_v52  ;;  %v537_v7 = vsel %vm416_vm2, %v499_v59, 0.0 }
  0xe9   :  { %v535_v0 = vsel %vm416_vm2, %v498_v61, 0.0  ;;  %v1227_v1 = vpop.f32.mrb[4].mxu0  ;;  %v1229_v2 = vpop.f32.mrb[4].mxu1 }
  0xea   :  { %v536_v3 = vadd.f32 %v535_v0, %v534_v56  ;;  %v1231_v4 = vpop.f32.mrb[5].mxu0  ;;  %v423_v5 = vadd.f32 %v422_v63, %v421_v62  ;;  %v1233_v6 = vpop.f32.mrb[5].mxu1  ;;  %v501_v8 = vmul.f32 %v1227_v1, %v1227_v1  ;;  %v426_v13 = vsel %vm416_vm2, %v1227_v1, 0.0 }
  0xeb   :  { %v424_v9 = vsel %vm416_vm2, %v1231_v4, 0.0  ;;  %v500_v10 = vmul.f32 %v1231_v4, %v1231_v4 }
  0xec   :  { %v425_v11 = vadd.f32 %v424_v9, %v423_v5  ;;  %v538_v12 = vadd.f32 %v537_v7, %v536_v3  ;;  %v541_v21 = vsel %vm416_vm2, %v501_v8, 0.0 }
  0xed   :  { %v539_v14 = vsel %vm416_vm2, %v500_v10, 0.0  ;;  %v1245_v15 = vpop.f32.mrb[6].mxu0  ;;  %v1247_v16 = vpop.f32.mrb[6].mxu1 }
  0xee   :  { %v540_v17 = vadd.f32 %v539_v14, %v538_v12  ;;  %v1249_v18 = vpop.f32.mrb[7].mxu0  ;;  %v427_v19 = vadd.f32 %v426_v13, %v425_v11  ;;  %v1251_v20 = vpop.f32.mrb[7].mxu1  ;;  %v503_v22 = vmul.f32 %v1245_v15, %v1245_v15  ;;  %v430_v27 = vsel %vm416_vm2, %v1245_v15, 0.0 }
  0xef   :  { %v428_v23 = vsel %vm416_vm2, %v1249_v18, 0.0  ;;  %v502_v24 = vmul.f32 %v1249_v18, %v1249_v18 }
  0xf0   :  { %v429_v25 = vadd.f32 %v428_v23, %v427_v19  ;;  %v542_v26 = vadd.f32 %v541_v21, %v540_v17  ;;  %v545_v35 = vsel %vm416_vm2, %v503_v22, 0.0 }
  0xf1   :  { %v543_v28 = vsel %vm416_vm2, %v502_v24, 0.0  ;;  %v1263_v29 = vpop.f32.mrb[8].mxu0  ;;  %v1265_v30 = vpop.f32.mrb[8].mxu1 }
  0xf2   :  { %v544_v31 = vadd.f32 %v543_v28, %v542_v26  ;;  %v1267_v32 = vpop.f32.mrb[9].mxu0  ;;  %v431_v33 = vadd.f32 %v430_v27, %v429_v25  ;;  %v1269_v34 = vpop.f32.mrb[9].mxu1  ;;  %v505_v36 = vmul.f32 %v1263_v29, %v1263_v29  ;;  %v434_v41 = vsel %vm416_vm2, %v1263_v29, 0.0 }
  0xf3   :  { %v432_v37 = vsel %vm416_vm2, %v1267_v32, 0.0  ;;  %v504_v38 = vmul.f32 %v1267_v32, %v1267_v32 }
  0xf4   :  { %v433_v39 = vadd.f32 %v432_v37, %v431_v33  ;;  %v546_v40 = vadd.f32 %v545_v35, %v544_v31  ;;  %v549_v53 = vsel %vm416_vm2, %v505_v36, 0.0 }
  0xf5   :  { %v547_v42 = vsel %vm416_vm2, %v504_v38, 0.0  ;;  %v1281_v45 = vpop.f32.mrb[10].mxu0  ;;  %v1283_v46 = vpop.f32.mrb[10].mxu1 }
  0xf6   :  { %v548_v49 = vadd.f32 %v547_v42, %v546_v40  ;;  %v1285_v50 = vpop.f32.mrb[11].mxu0  ;;  %v435_v51 = vadd.f32 %v434_v41, %v433_v39  ;;  %v1287_v52 = vpop.f32.mrb[11].mxu1  ;;  %v507_v56 = vmul.f32 %v1281_v45, %v1281_v45  ;;  %v438_v63 = vsel %vm416_vm2, %v1281_v45, 0.0 }
  0xf7   :  { %v436_v59 = vsel %vm416_vm2, %v1285_v50, 0.0  ;;  %v506_v60 = vmul.f32 %v1285_v50, %v1285_v50 }
  0xf8   :  { %v437_v61 = vadd.f32 %v436_v59, %v435_v51  ;;  %v550_v62 = vadd.f32 %v549_v53, %v548_v49  ;;  %v553_v11 = vsel %vm416_vm2, %v507_v56, 0.0  ;;  %v514_v56 = vmul.f32 %v1202_v48, %v1202_v48 }
  0xf9   :  { %v551_v0 = vsel %vm416_vm2, %v506_v60, 0.0  ;;  %v1299_v3 = vpop.f32.mrb[12].mxu0  ;;  %v1301_v5 = vpop.f32.mrb[12].mxu1 }
  0xfa   :  { %v552_v7 = vadd.f32 %v551_v0, %v550_v62  ;;  %v1303_v8 = vpop.f32.mrb[13].mxu0  ;;  %v439_v9 = vadd.f32 %v438_v63, %v437_v61  ;;  %v1305_v10 = vpop.f32.mrb[13].mxu1  ;;  %v509_v12 = vmul.f32 %v1299_v3, %v1299_v3  ;;  %v442_v21 = vsel %vm416_vm2, %v1299_v3, 0.0 }
  0xfb   :  { %v440_v13 = vsel %vm416_vm2, %v1303_v8, 0.0  ;;  %v508_v14 = vmul.f32 %v1303_v8, %v1303_v8 }
  0xfc   :  { %v441_v17 = vadd.f32 %v440_v13, %v439_v9  ;;  %v554_v19 = vadd.f32 %v553_v11, %v552_v7  ;;  %v557_v31 = vsel %vm416_vm2, %v509_v12, 0.0  ;;  %v452_v12 = vsel %vm416_vm2, %v1202_v48, 0.0 }
  0xfd   :  { %v555_v22 = vsel %vm416_vm2, %v508_v14, 0.0  ;;  %v1317_v23 = vpop.f32.mrb[14].mxu0  ;;  %v1319_v24 = vpop.f32.mrb[14].mxu1 }
  0xfe   :  { %v556_v25 = vadd.f32 %v555_v22, %v554_v19  ;;  %v1321_v26 = vpop.f32.mrb[15].mxu0  ;;  %v443_v27 = vadd.f32 %v442_v21, %v441_v17  ;;  %v1323_v28 = vpop.f32.mrb[15].mxu1  ;;  %v511_v33 = vmul.f32 %v1317_v23, %v1317_v23  ;;  %v446_v39 = vsel %vm416_vm2, %v1317_v23, 0.0 }
  0xff   :  { %v444_v35 = vsel %vm416_vm2, %v1321_v26, 0.0  ;;  %v510_v36 = vmul.f32 %v1321_v26, %v1321_v26  ;;  %v515_v19 = vmul.f32 %v1194_v44, %v1194_v44  ;;  %v567_v21 = vsel %vm416_vm2, %v514_v56, 0.0 }
 0x100   :  { %v445_v37 = vadd.f32 %v444_v35, %v443_v27  ;;  %v558_v38 = vadd.f32 %v557_v31, %v556_v25  ;;  %v561_v60 = vsel %vm416_vm2, %v511_v33, 0.0  ;;  %v516_v22 = vmul.f32 %v1216_v58, %v1216_v58 }
 0x101   :  { %v559_v40 = vsel %vm416_vm2, %v510_v36, 0.0  ;;  %v1335_v41 = vpop.f32.mrb[16].mxu0  ;;  %v1337_v42 = vpop.f32.mrb[16].mxu1  ;;  %v454_v31 = vsel %vm416_vm2, %v1194_v44, 0.0  ;;  %v456_v33 = vsel %vm416_vm2, %v1216_v58, 0.0  ;;  %v458_v56 = vsel %vm416_vm2, %v1212_v55, 0.0 }
 0x102   :  { %v560_v49 = vadd.f32 %v559_v40, %v558_v38  ;;  %v1339_v51 = vpop.f32.mrb[17].mxu0  ;;  %v447_v53 = vadd.f32 %v446_v39, %v445_v37  ;;  %v1343_v59 = vpop.f32.mrb[17].mxu1  ;;  %v513_v61 = vmul.f32 %v1335_v41, %v1335_v41  ;;  %v450_v9 = vsel %vm416_vm2, %v1335_v41, 0.0 }
 0x103   :  { %v448_v62 = vsel %vm416_vm2, %v1339_v51, 0.0  ;;  %v512_v63 = vmul.f32 %v1339_v51, %v1339_v51  ;;  %v569_v37 = vsel %vm416_vm2, %v515_v19, 0.0  ;;  %v517_v38 = vmul.f32 %v1212_v55, %v1212_v55 }
 0x104   :  { %v449_v0 = vadd.f32 %v448_v62, %v447_v53  ;;  %v562_v7 = vadd.f32 %v561_v60, %v560_v49  ;;  %v565_v17 = vsel %vm416_vm2, %v513_v61, 0.0  ;;  %v571_v39 = vsel %vm416_vm2, %v516_v22, 0.0 }
 0x105   :  { %v563_v11 = vsel %vm416_vm2, %v512_v63, 0.0  ;;  %v518_v40 = vmul.f32 %v1233_v6, %v1233_v6  ;;  %v460_v60 = vsel %vm416_vm2, %v1233_v6, 0.0  ;;  %v573_v63 = vsel %vm416_vm2, %v517_v38, 0.0 }
 0x106   :  { %v451_v13 = vadd.f32 %v450_v9, %v449_v0  ;;  %v564_v14 = vadd.f32 %v563_v11, %v562_v7  ;;  %v519_v0 = vmul.f32 %v1229_v2, %v1229_v2  ;;  %v520_v9 = vmul.f32 %v1251_v20, %v1251_v20 }
 0x107   :  { %v575_v7 = vsel %vm416_vm2, %v518_v40, 0.0  ;;  %v521_v22 = vmul.f32 %v1247_v16, %v1247_v16  ;;  %v523_v40 = vmul.f32 %v1265_v30, %v1265_v30 }
 0x108   :  { %v566_v25 = vadd.f32 %v565_v17, %v564_v14  ;;  %v453_v27 = vadd.f32 %v452_v12, %v451_v13  ;;  %v462_v13 = vsel %vm416_vm2, %v1229_v2, 0.0  ;;  %v464_v14 = vsel %vm416_vm2, %v1251_v20, 0.0 }
 0x10a   :  { %v568_v35 = vadd.f32 %v567_v21, %v566_v25  ;;  %v455_v36 = vadd.f32 %v454_v31, %v453_v27  ;;  %v577_v21 = vsel %vm416_vm2, %v519_v0, 0.0  ;;  %v579_v25 = vsel %vm416_vm2, %v520_v9, 0.0 }
 0x10b   :  { %v522_v27 = vmul.f32 %v1269_v34, %v1269_v34  ;;  %v525_v9 = vmul.f32 %v1283_v46, %v1283_v46 }
 0x10c   :  { %v457_v49 = vadd.f32 %v456_v33, %v455_v36  ;;  %v570_v53 = vadd.f32 %v569_v37, %v568_v35  ;;  %v466_v35 = vsel %vm416_vm2, %v1247_v16, 0.0  ;;  %v468_v36 = vsel %vm416_vm2, %v1269_v34, 0.0 }
 0x10e   :  { %v572_v61 = vadd.f32 %v571_v39, %v570_v53  ;;  %v459_v62 = vadd.f32 %v458_v56, %v457_v49  ;;  %v581_v39 = vsel %vm416_vm2, %v521_v22, 0.0  ;;  %v583_v49 = vsel %vm416_vm2, %v522_v27, 0.0 }
 0x10f   :  { %v524_v53 = vmul.f32 %v1287_v52, %v1287_v52  ;;  %v527_v27 = vmul.f32 %v1301_v5, %v1301_v5 }
 0x110   :  { %v461_v11 = vadd.f32 %v460_v60, %v459_v62  ;;  %v574_v12 = vadd.f32 %v573_v63, %v572_v61  ;;  %v470_v61 = vsel %vm416_vm2, %v1265_v30, 0.0  ;;  %v472_v62 = vsel %vm416_vm2, %v1287_v52, 0.0 }
 0x112   :  { %v576_v17 = vadd.f32 %v575_v7, %v574_v12  ;;  %v463_v19 = vadd.f32 %v462_v13, %v461_v11  ;;  %v585_v7 = vsel %vm416_vm2, %v523_v40, 0.0  ;;  %v587_v11 = vsel %vm416_vm2, %v524_v53, 0.0 }
 0x113   :  { %v526_v12 = vmul.f32 %v1305_v10, %v1305_v10  ;;  %v529_v53 = vmul.f32 %v1319_v24, %v1319_v24 }
 0x114   :  { %v465_v31 = vadd.f32 %v464_v14, %v463_v19  ;;  %v578_v33 = vadd.f32 %v577_v21, %v576_v17  ;;  %v474_v17 = vsel %vm416_vm2, %v1283_v46, 0.0  ;;  %v476_v19 = vsel %vm416_vm2, %v1305_v10, 0.0 }
 0x116   :  { %v580_v37 = vadd.f32 %v579_v25, %v578_v33  ;;  %v467_v38 = vadd.f32 %v466_v35, %v465_v31  ;;  %v589_v25 = vsel %vm416_vm2, %v525_v9, 0.0  ;;  %v591_v31 = vsel %vm416_vm2, %v526_v12, 0.0 }
 0x117   :  { %v528_v33 = vmul.f32 %v1323_v28, %v1323_v28  ;;  %v531_v12 = vmul.f32 %v1337_v42, %v1337_v42 }
 0x118   :  { %v469_v56 = vadd.f32 %v468_v36, %v467_v38  ;;  %v582_v60 = vadd.f32 %v581_v39, %v580_v37  ;;  %v478_v37 = vsel %vm416_vm2, %v1301_v5, 0.0  ;;  %v480_v38 = vsel %vm416_vm2, %v1323_v28, 0.0 }
 0x11a   :  { %v584_v63 = vadd.f32 %v583_v49, %v582_v60  ;;  %v471_v0 = vadd.f32 %v470_v61, %v469_v56  ;;  %v593_v49 = vsel %vm416_vm2, %v527_v27, 0.0  ;;  %v595_v56 = vsel %vm416_vm2, %v528_v33, 0.0 }
 0x11b   :  { %v530_v60 = vmul.f32 %v1343_v59, %v1343_v59 }
 0x11c   :  { %v473_v13 = vadd.f32 %v472_v62, %v471_v0  ;;  %v586_v14 = vadd.f32 %v585_v7, %v584_v63  ;;  %v482_v63 = vsel %vm416_vm2, %v1319_v24, 0.0  ;;  %v484_v0 = vsel %vm416_vm2, %v1343_v59, 0.0 }
 0x11e   :  { %v588_v21 = vadd.f32 %v587_v11, %v586_v14  ;;  %v475_v22 = vadd.f32 %v474_v17, %v473_v13  ;;  %v597_v11 = vsel %vm416_vm2, %v529_v53, 0.0  ;;  %v599_v13 = vsel %vm416_vm2, %v530_v60, 0.0 }
 0x120   :  { %v477_v35 = vadd.f32 %v476_v19, %v475_v22  ;;  %v590_v36 = vadd.f32 %v589_v25, %v588_v21  ;;  %v486_v19 = vsel %vm416_vm2, %v1337_v42, 0.0  ;;  %v601_v25 = vsel %vm416_vm2, %v531_v12, 0.0 }
 0x122   :  { %v592_v39 = vadd.f32 %v591_v31, %v590_v36  ;;  %v479_v40 = vadd.f32 %v478_v37, %v477_v35 }
 0x124   :  { %v481_v61 = vadd.f32 %v480_v38, %v479_v40  ;;  %v594_v62 = vadd.f32 %v593_v49, %v592_v39 }
 0x126   :  { %v596_v7 = vadd.f32 %v595_v56, %v594_v62  ;;  %v483_v9 = vadd.f32 %v482_v63, %v481_v61 }
 0x128   :  { %v485_v14 = vadd.f32 %v484_v0, %v483_v9  ;;  %v598_v17 = vadd.f32 %v597_v11, %v596_v7 }
 0x12a   :  { %v487_v21 = vadd.f32 %v486_v19, %v485_v14  ;;  %v600_v22 = vadd.f32 %v599_v13, %v598_v17 }
 0x12c   :  { %v488_v27 = vrot.slane %v487_v21, 4  ;;  %v602_v31 = vadd.f32 %v601_v25, %v600_v22 }
 0x12e   :  { %v489_v33 = vadd.f32 %v488_v27, %v487_v21  ;;  %v603_v35 = vrot.slane %v602_v31, 4 }
 0x130   :  { %v490_v36 = vrot.slane %v489_v33, 2  ;;  %v604_v37 = vadd.f32 %v603_v35, %v602_v31 }
 0x132   :  { %v491_v38 = vadd.f32 %v490_v36, %v489_v33  ;;  %v605_v39 = vrot.slane %v604_v37, 2 }
 0x134   :  { %v492_v40 = vrot.slane %v491_v38, 1  ;;  %v606_v49 = vadd.f32 %v605_v39, %v604_v37 }
 0x136   :  { %v493_v53 = vadd.f32 %v492_v40, %v491_v38  ;;  %v607_v56 = vrot.slane %v606_v49, 1 }
 0x138   :  { %v1444_v60 = vmul.f32 0.0034722222, %v493_v53  ;;  %v608_v61 = vadd.f32 %v607_v56, %v606_v49 }
 0x13a   :  { %v609_v62 = vmul.f32 0.0034722222, %v608_v61  ;;  %v610_v63 = vmul.f32 %v1444_v60, %v1444_v60  ;;  %v612_v0 = vsub.f32 %v1200_v47, %v1444_v60  ;;  %v613_v7 = vsub.f32 %v1192_v43, %v1444_v60 }
 0x13b   :  { %v614_v9 = vsub.f32 %v1214_v57, %v1444_v60  ;;  %v615_v11 = vsub.f32 %v1210_v54, %v1444_v60  ;;  %v616_v12 = vsub.f32 %v1231_v4, %v1444_v60  ;;  %v617_v13 = vsub.f32 %v1227_v1, %v1444_v60 }
 0x13c   :  { %v611_v14 = vsub.f32 %v609_v62, %v610_v63  ;;  %v618_v17 = vsub.f32 %v1249_v18, %v1444_v60  ;;  %v619_v47 = vsub.f32 %v1245_v15, %v1444_v60  ;;  %v620_v43 = vsub.f32 %v1267_v32, %v1444_v60 }
 0x13d   :  { %v621_v57 = vsub.f32 %v1263_v29, %v1444_v60  ;;  %v622_v54 = vsub.f32 %v1285_v50, %v1444_v60  ;;  %v623_v4 = vsub.f32 %v1281_v45, %v1444_v60  ;;  %v624_v1 = vsub.f32 %v1303_v8, %v1444_v60 }
 0x13e   :  { %v625_v18 = vsub.f32 %v1299_v3, %v1444_v60  ;;  %v626_v15 = vsub.f32 %v1321_v26, %v1444_v60  ;;  %v627_v32 = vsub.f32 %v1317_v23, %v1444_v60  ;;  %v628_v29 = vsub.f32 %v1339_v51, %v1444_v60 }
 0x13f   :  { %v629_v50 = vsub.f32 %v1335_v41, %v1444_v60  ;;  %v630_v45 = vsub.f32 %v1202_v48, %v1444_v60  ;;  %v631_v8 = vsub.f32 %v1194_v44, %v1444_v60  ;;  %v632_v3 = vsub.f32 %v1216_v58, %v1444_v60 }
 0x140   :  { %v633_v26 = vsub.f32 %v1212_v55, %v1444_v60  ;;  %v634_v23 = vsub.f32 %v1233_v6, %v1444_v60  ;;  %v635_v51 = vsub.f32 %v1229_v2, %v1444_v60  ;;  %v636_v41 = vsub.f32 %v1251_v20, %v1444_v60 }
 0x141   :  { %v637_v48 = vsub.f32 %v1247_v16, %v1444_v60  ;;  %v638_v44 = vsub.f32 %v1269_v34, %v1444_v60  ;;  %v639_v58 = vsub.f32 %v1265_v30, %v1444_v60  ;;  %v640_v55 = vsub.f32 %v1287_v52, %v1444_v60 }
 0x142   :  { %v641_v6 = vsub.f32 %v1283_v46, %v1444_v60  ;;  %v642_v2 = vsub.f32 %v1305_v10, %v1444_v60  ;;  %v643_v20 = vsub.f32 %v1301_v5, %v1444_v60  ;;  %v644_v16 = vsub.f32 %v1323_v28, %v1444_v60 }
 0x143   :  { %v645_v34 = vsub.f32 %v1319_v24, %v1444_v60  ;;  %v646_v30 = vsub.f32 %v1343_v59, %v1444_v60  ;;  %v647_v52 = vsub.f32 %v1337_v42, %v1444_v60  ;;  %v648_v19 = vadd.f32 1e-05, %v611_v14 }
 0x145   :  { %1006 = vrsqrt.f32 %v648_v19 }
 0x14f   :  { %v1007_v46 = vpop.eup %1006 }
 0x150   :  { %v650_v21 = vmul.f32 %v1007_v46, %v612_v0  ;;  %v651_v10 = vmul.f32 %v1007_v46, %v613_v7  ;;  %v652_v22 = vmul.f32 %v1007_v46, %v614_v9  ;;  %v653_v25 = vmul.f32 %v1007_v46, %v615_v11  ;;  %v885_v11 = vld [vmem:[%s1732_s2] ss:$0 sm:$0xff] }
 0x151   :  { %v654_v5 = vmul.f32 %v1007_v46, %v616_v12  ;;  %v655_v27 = vmul.f32 %v1007_v46, %v617_v13  ;;  %v656_v31 = vmul.f32 %v1007_v46, %v618_v17  ;;  %v657_v28 = vmul.f32 %v1007_v46, %v619_v47 }
 0x152   :  { %v658_v33 = vmul.f32 %v1007_v46, %v620_v43  ;;  %v659_v35 = vmul.f32 %v1007_v46, %v621_v57  ;;  %v660_v24 = vmul.f32 %v1007_v46, %v622_v54  ;;  %v661_v36 = vmul.f32 %v1007_v46, %v623_v4 }
 0x153   :  { %v662_v37 = vmul.f32 %v1007_v46, %v624_v1  ;;  %v663_v59 = vmul.f32 %v1007_v46, %v625_v18  ;;  %v664_v38 = vmul.f32 %v1007_v46, %v626_v15  ;;  %v665_v39 = vmul.f32 %v1007_v46, %v627_v32 }
 0x154   :  { %v666_v42 = vmul.f32 %v1007_v46, %v628_v29  ;;  %v667_v40 = vmul.f32 %v1007_v46, %v629_v50  ;;  %v668_v49 = vmul.f32 %v1007_v46, %v630_v45  ;;  %v669_v53 = vmul.f32 %v1007_v46, %v631_v8 }
 0x155   :  { %v670_v56 = vmul.f32 %v1007_v46, %v632_v3  ;;  %v671_v60 = vmul.f32 %v1007_v46, %v633_v26  ;;  %v672_v61 = vmul.f32 %v1007_v46, %v634_v23  ;;  %v673_v62 = vmul.f32 %v1007_v46, %v635_v51 }
 0x156   :  { %v674_v63 = vmul.f32 %v1007_v46, %v636_v41  ;;  %v675_v0 = vmul.f32 %v1007_v46, %v637_v48  ;;  %v676_v7 = vmul.f32 %v1007_v46, %v638_v44  ;;  %v677_v9 = vmul.f32 %v1007_v46, %v639_v58 }
 0x157   :  { %v678_v12 = vmul.f32 %v1007_v46, %v640_v55  ;;  %v679_v13 = vmul.f32 %v1007_v46, %v641_v6  ;;  %v680_v14 = vmul.f32 %v1007_v46, %v642_v2  ;;  %v681_v17 = vmul.f32 %v1007_v46, %v643_v20 }
 0x158   :  { %v682_v47 = vmul.f32 %v1007_v46, %v644_v16  ;;  %v683_v43 = vmul.f32 %v1007_v46, %v645_v34  ;;  %v684_v57 = vmul.f32 %v1007_v46, %v646_v30  ;;  %v685_v54 = vmul.f32 %v1007_v46, %v647_v52 }
 0x159   :  { %v693_v4 = vmul.f32 %v885_v11, %v650_v21  ;;  %v694_v1 = vmul.f32 %v885_v11, %v651_v10  ;;  %v695_v18 = vmul.f32 %v885_v11, %v652_v22  ;;  %v696_v15 = vmul.f32 %v885_v11, %v653_v25  ;;  %v886_v10 = vld [vmem:[%s1733_s3] ss:$0 sm:$0xff] }
 0x15a   :  { %v697_v32 = vmul.f32 %v885_v11, %v654_v5  ;;  %v698_v29 = vmul.f32 %v885_v11, %v655_v27  ;;  %v699_v50 = vmul.f32 %v885_v11, %v656_v31  ;;  %v700_v45 = vmul.f32 %v885_v11, %v657_v28 }
 0x15b   :  { %v701_v8 = vmul.f32 %v885_v11, %v658_v33  ;;  %v702_v3 = vmul.f32 %v885_v11, %v659_v35  ;;  %v703_v26 = vmul.f32 %v885_v11, %v660_v24  ;;  %v704_v23 = vmul.f32 %v885_v11, %v661_v36 }
 0x15c   :  { %v705_v51 = vmul.f32 %v885_v11, %v662_v37  ;;  %v706_v41 = vmul.f32 %v885_v11, %v663_v59  ;;  %v707_v48 = vmul.f32 %v885_v11, %v664_v38  ;;  %v708_v44 = vmul.f32 %v885_v11, %v665_v39 }
 0x15d   :  { %v709_v58 = vmul.f32 %v885_v11, %v666_v42  ;;  %v710_v55 = vmul.f32 %v885_v11, %v667_v40  ;;  %v711_v6 = vmul.f32 %v885_v11, %v668_v49  ;;  %v712_v2 = vmul.f32 %v885_v11, %v669_v53 }
 0x15e   :  { %v713_v20 = vmul.f32 %v885_v11, %v670_v56  ;;  %v714_v16 = vmul.f32 %v885_v11, %v671_v60  ;;  %v715_v34 = vmul.f32 %v885_v11, %v672_v61  ;;  %v716_v30 = vmul.f32 %v885_v11, %v673_v62 }
 0x15f   :  { %v717_v52 = vmul.f32 %v885_v11, %v674_v63  ;;  %v718_v19 = vmul.f32 %v885_v11, %v675_v0  ;;  %v719_v46 = vmul.f32 %v885_v11, %v676_v7  ;;  %v720_v21 = vmul.f32 %v885_v11, %v677_v9 }
 0x160   :  { %v721_v22 = vmul.f32 %v885_v11, %v678_v12  ;;  %v722_v25 = vmul.f32 %v885_v11, %v679_v13  ;;  %v723_v5 = vmul.f32 %v885_v11, %v680_v14  ;;  %v724_v27 = vmul.f32 %v885_v11, %v681_v17 }
 0x161   :  { %v725_v31 = vmul.f32 %v885_v11, %v682_v47  ;;  %v726_v28 = vmul.f32 %v885_v11, %v683_v43  ;;  %v727_v33 = vmul.f32 %v885_v11, %v684_v57  ;;  %v728_v35 = vmul.f32 %v885_v11, %v685_v54 }
 0x162   :  { %v736_v24 = vadd.f32 %v886_v10, %v693_v4  ;;  %v737_v36 = vadd.f32 %v886_v10, %v694_v1  ;;  %v738_v37 = vadd.f32 %v886_v10, %v695_v18  ;;  %v739_v59 = vadd.f32 %v886_v10, %v696_v15 }
 0x163   :  { %v740_v38 = vadd.f32 %v886_v10, %v697_v32  ;;  %v741_v39 = vadd.f32 %v886_v10, %v698_v29  ;;  %v742_v42 = vadd.f32 %v886_v10, %v699_v50  ;;  %v743_v40 = vadd.f32 %v886_v10, %v700_v45 }
 0x164   :  { %v744_v49 = vadd.f32 %v886_v10, %v701_v8  ;;  %v745_v53 = vadd.f32 %v886_v10, %v702_v3  ;;  %v746_v56 = vadd.f32 %v886_v10, %v703_v26  ;;  %v747_v60 = vadd.f32 %v886_v10, %v704_v23 }
 0x165   :  { %v748_v61 = vadd.f32 %v886_v10, %v705_v51  ;;  %v749_v62 = vadd.f32 %v886_v10, %v706_v41  ;;  %v750_v63 = vadd.f32 %v886_v10, %v707_v48  ;;  %v751_v0 = vadd.f32 %v886_v10, %v708_v44 }
 0x166   :  { %v1526_v7 = vadd.f32 %v886_v10, %v709_v58  ;;  %v1528_v9 = vadd.f32 %v886_v10, %v710_v55  ;;  %v1530_v11 = vadd.f32 %v886_v10, %v711_v6  ;;  %v1532_v12 = vadd.f32 %v886_v10, %v712_v2 }
 0x167   :  { %v1534_v13 = vadd.f32 %v886_v10, %v713_v20  ;;  %v1536_v14 = vadd.f32 %v886_v10, %v714_v16  ;;  %v1538_v17 = vadd.f32 %v886_v10, %v715_v34  ;;  %v1540_v47 = vadd.f32 %v886_v10, %v716_v30 }
 0x168   :  { %v1542_v43 = vadd.f32 %v886_v10, %v717_v52  ;;  %v1544_v57 = vadd.f32 %v886_v10, %v718_v19  ;;  %v1546_v54 = vadd.f32 %v886_v10, %v719_v46  ;;  %v1548_v4 = vadd.f32 %v886_v10, %v720_v21 }
 0x169   :  { %v1550_v1 = vadd.f32 %v886_v10, %v721_v22  ;;  %v1552_v18 = vadd.f32 %v886_v10, %v722_v25  ;;  %v1554_v15 = vadd.f32 %v886_v10, %v723_v5  ;;  %v1556_v32 = vadd.f32 %v886_v10, %v724_v27 }
 0x16a   :  { %v1558_v29 = vadd.f32 %v886_v10, %v725_v31  ;;  %v1560_v50 = vadd.f32 %v886_v10, %v726_v28  ;;  %v1562_v45 = vadd.f32 %v886_v10, %v727_v33  ;;  %v1564_v8 = vadd.f32 %v886_v10, %v728_v35 }
 0x16b   :  { %v772_v3 = vmax.f32 %v736_v24, 0.0  ;;  %v773_v26 = vmax.f32 %v737_v36, 0.0  ;;  %v774_v23 = vmax.f32 %v738_v37, 0.0  ;;  %v775_v51 = vmax.f32 %v739_v59, 0.0 }
 0x16c   :  { %v776_v41 = vmax.f32 %v740_v38, 0.0  ;;  %v777_v48 = vmax.f32 %v741_v39, 0.0  ;;  %v778_v44 = vmax.f32 %v742_v42, 0.0  ;;  %v779_v58 = vmax.f32 %v743_v40, 0.0 }
 0x16d   :  { %v780_v55 = vmax.f32 %v744_v49, 0.0  ;;  %v781_v6 = vmax.f32 %v745_v53, 0.0  ;;  %v782_v2 = vmax.f32 %v746_v56, 0.0  ;;  %v783_v20 = vmax.f32 %v747_v60, 0.0  ;;  %808 = vst.msk [vmem:[%s1734_s4] sm:$0xff] %vm416_vm2, %v772_v3  ;;  %809 = vst.msk [vmem:[%s1734_s4 + $0x8] sm:$0xff] %vm416_vm2, %v773_v26 }
 0x16e   :  { %810 = vst.msk [vmem:[%s1734_s4 + $0x10] sm:$0xff] %vm416_vm2, %v774_v23  ;;  %811 = vst.msk [vmem:[%s1734_s4 + $0x18] sm:$0xff] %vm416_vm2, %v775_v51  ;;  %v784_v16 = vmax.f32 %v748_v61, 0.0  ;;  %v785_v34 = vmax.f32 %v749_v62, 0.0  ;;  %v786_v30 = vmax.f32 %v750_v63, 0.0  ;;  %v787_v52 = vmax.f32 %v751_v0, 0.0 }
 0x16f   :  { %812 = vst.msk [vmem:[%s1734_s4 + $0x20] sm:$0xff] %vm416_vm2, %v776_v41  ;;  %813 = vst.msk [vmem:[%s1734_s4 + $0x28] sm:$0xff] %vm416_vm2, %v777_v48  ;;  %v788_v19 = vmax.f32 %v1526_v7, 0.0  ;;  %v789_v46 = vmax.f32 %v1528_v9, 0.0  ;;  %v790_v21 = vmax.f32 %v1530_v11, 0.0  ;;  %v791_v10 = vmax.f32 %v1532_v12, 0.0 }
 0x170   :  { %814 = vst.msk [vmem:[%s1734_s4 + $0x30] sm:$0xff] %vm416_vm2, %v778_v44  ;;  %815 = vst.msk [vmem:[%s1734_s4 + $0x38] sm:$0xff] %vm416_vm2, %v779_v58  ;;  %v792_v22 = vmax.f32 %v1534_v13, 0.0  ;;  %v793_v25 = vmax.f32 %v1536_v14, 0.0  ;;  %v794_v5 = vmax.f32 %v1538_v17, 0.0  ;;  %v795_v27 = vmax.f32 %v1540_v47, 0.0 }
 0x171   :  { %816 = vst.msk [vmem:[%s1734_s4 + $0x40] sm:$0xff] %vm416_vm2, %v780_v55  ;;  %817 = vst.msk [vmem:[%s1734_s4 + $0x48] sm:$0xff] %vm416_vm2, %v781_v6  ;;  %v796_v31 = vmax.f32 %v1542_v43, 0.0  ;;  %v797_v28 = vmax.f32 %v1544_v57, 0.0  ;;  %v798_v33 = vmax.f32 %v1546_v54, 0.0  ;;  %v799_v35 = vmax.f32 %v1548_v4, 0.0 }
 0x172   :  { %818 = vst.msk [vmem:[%s1734_s4 + $0x50] sm:$0xff] %vm416_vm2, %v782_v2  ;;  %819 = vst.msk [vmem:[%s1734_s4 + $0x58] sm:$0xff] %vm416_vm2, %v783_v20  ;;  %v800_v24 = vmax.f32 %v1550_v1, 0.0  ;;  %v801_v36 = vmax.f32 %v1552_v18, 0.0  ;;  %v802_v37 = vmax.f32 %v1554_v15, 0.0  ;;  %v803_v59 = vmax.f32 %v1556_v32, 0.0 }
 0x173   :  { %820 = vst.msk [vmem:[%s1734_s4 + $0x60] sm:$0xff] %vm416_vm2, %v784_v16  ;;  %821 = vst.msk [vmem:[%s1734_s4 + $0x68] sm:$0xff] %vm416_vm2, %v785_v34  ;;  %v804_v38 = vmax.f32 %v1558_v29, 0.0  ;;  %v805_v39 = vmax.f32 %v1560_v50, 0.0  ;;  %v806_v42 = vmax.f32 %v1562_v45, 0.0  ;;  %v807_v40 = vmax.f32 %v1564_v8, 0.0 }
 0x174   :  { %822 = vst.msk [vmem:[%s1734_s4 + $0x70] sm:$0xff] %vm416_vm2, %v786_v30  ;;  %823 = vst.msk [vmem:[%s1734_s4 + $0x78] sm:$0xff] %vm416_vm2, %v787_v52 }
 0x175   :  { %824 = vst.msk [vmem:[%s1734_s4 + $0x80] sm:$0xff] %vm416_vm2, %v788_v19  ;;  %825 = vst.msk [vmem:[%s1734_s4 + $0x88] sm:$0xff] %vm416_vm2, %v789_v46 }
 0x176   :  { %826 = vst.msk [vmem:[%s1734_s4 + $0x90] sm:$0xff] %vm416_vm2, %v790_v21  ;;  %827 = vst.msk [vmem:[%s1734_s4 + $0x98] sm:$0xff] %vm416_vm2, %v791_v10 }
 0x177   :  { %828 = vst.msk [vmem:[%s1734_s4 + $0xa0] sm:$0xff] %vm416_vm2, %v792_v22  ;;  %829 = vst.msk [vmem:[%s1734_s4 + $0xa8] sm:$0xff] %vm416_vm2, %v793_v25 }
 0x178   :  { %830 = vst.msk [vmem:[%s1734_s4 + $0xb0] sm:$0xff] %vm416_vm2, %v794_v5  ;;  %831 = vst.msk [vmem:[%s1734_s4 + $0xb8] sm:$0xff] %vm416_vm2, %v795_v27 }
 0x179   :  { %832 = vst.msk [vmem:[%s1734_s4 + $0xc0] sm:$0xff] %vm416_vm2, %v796_v31  ;;  %833 = vst.msk [vmem:[%s1734_s4 + $0xc8] sm:$0xff] %vm416_vm2, %v797_v28 }
 0x17a   :  { %834 = vst.msk [vmem:[%s1734_s4 + $0xd0] sm:$0xff] %vm416_vm2, %v798_v33  ;;  %835 = vst.msk [vmem:[%s1734_s4 + $0xd8] sm:$0xff] %vm416_vm2, %v799_v35 }
 0x17b   :  { %836 = vst.msk [vmem:[%s1734_s4 + $0xe0] sm:$0xff] %vm416_vm2, %v800_v24  ;;  %837 = vst.msk [vmem:[%s1734_s4 + $0xe8] sm:$0xff] %vm416_vm2, %v801_v36 }
 0x17c   :  { %838 = vst.msk [vmem:[%s1734_s4 + $0xf0] sm:$0xff] %vm416_vm2, %v802_v37  ;;  %839 = vst.msk [vmem:[%s1734_s4 + $0xf8] sm:$0xff] %vm416_vm2, %v803_v59 }
 0x17d   :  { %840 = vst.msk [vmem:[%s1734_s4 + $0x100] sm:$0xff] %vm416_vm2, %v804_v38  ;;  %841 = vst.msk [vmem:[%s1734_s4 + $0x108] sm:$0xff] %vm416_vm2, %v805_v39 }
 0x17e   :  { %842 = vst.msk [vmem:[%s1734_s4 + $0x110] sm:$0xff] %vm416_vm2, %v806_v42  ;;  %843 = vst.msk [vmem:[%s1734_s4 + $0x118] sm:$0xff] %vm416_vm2, %v807_v40 }

// kernel: encoder_forward.6
= control target key start
LH: loop header
LB: loop body
LE: loop exit
PB: predicated region body
PF: predicated region fallthrough
CT: control target
= control target key end

     0   :  { %vm121_vm0 = vcmask 259072   ;;  %s378_s1 = inlined_call_operand.vmem [shape: f32[256,32], index: 1, kind: input, shape index: {}]   ;;  %s379_s0 = inlined_call_operand.vmem [shape: f32[6,256], index: 0, kind: input, shape index: {}]   ;;  %s380_s2 = inlined_call_operand.vmem [shape: f32[1,32], index: 2, kind: input, shape index: {}]   ;;  %s381_s3 = inlined_call_operand.vmem [shape: f32[1,32], index: 3, kind: input, shape index: {}]   ;;  %s382_s4 = inlined_call_operand.vmem [shape: f32[6,32], index: 4, kind: output, shape index: {}]  }
   0x1   :  { %v35_v0 = vld [vmem:[%s378_s1 + $0x80] sm:$0xff]  ;;  %v36_v1 = vld [vmem:[%s378_s1 + $0x88] sm:$0xff]  ;;  %v37_v5 = vld [vmem:[%s378_s1 + $0x90] sm:$0xff] }
   0x2   :  { %v19_v2 = vld [vmem:[%s378_s1] sm:$0xff]  ;;  %v205_v3 = vpack.c.bf16 %v36_v1, %v35_v0  ;;  %v20_v4 = vld [vmem:[%s378_s1 + $0x8] sm:$0xff]  ;;  %v38_v6 = vld [vmem:[%s378_s1 + $0x98] sm:$0xff] }
   0x3   :  { %v207_v7 = vpack.c.bf16 %v20_v4, %v19_v2  ;;  %v209_v8 = vpack.c.bf16 %v38_v6, %v37_v5  ;;  %v21_v9 = vld [vmem:[%s378_s1 + $0x10] sm:$0xff]  ;;  %v22_v10 = vld [vmem:[%s378_s1 + $0x18] sm:$0xff]  ;;  %v39_v11 = vld [vmem:[%s378_s1 + $0xa0] sm:$0xff] }
   0x4   :  { %206 = vmatprep.subr.bf16.mxu0 %v205_v3  ;;  %v40_v12 = vld [vmem:[%s378_s1 + $0xa8] sm:$0xff]  ;;  %v211_v13 = vpack.c.bf16 %v22_v10, %v21_v9  ;;  %v23_v15 = vld [vmem:[%s378_s1 + $0x20] sm:$0xff]  ;;  %v41_v17 = vld [vmem:[%s378_s1 + $0xb0] sm:$0xff] }
   0x5   :  { %208 = vmatpush3.bf16.msra.mxu0 %v207_v7  ;;  %v213_v14 = vpack.c.bf16 %v40_v12, %v39_v11  ;;  %v24_v16 = vld [vmem:[%s378_s1 + $0x28] sm:$0xff]  ;;  %v42_v18 = vld [vmem:[%s378_s1 + $0xb8] sm:$0xff]  ;;  %v25_v21 = vld [vmem:[%s378_s1 + $0x30] sm:$0xff] }
   0x6   :  { %210 = vmatprep.subr.bf16.mxu0 %v209_v8  ;;  %v215_v19 = vpack.c.bf16 %v24_v16, %v23_v15  ;;  %v217_v20 = vpack.c.bf16 %v42_v18, %v41_v17  ;;  %v26_v22 = vld [vmem:[%s378_s1 + $0x38] sm:$0xff]  ;;  %v43_v23 = vld [vmem:[%s378_s1 + $0xc0] sm:$0xff]  ;;  %v44_v24 = vld [vmem:[%s378_s1 + $0xc8] sm:$0xff] }
   0x7   :  { %v18_v25 = vld [vmem:[%s379_s0 + $0x8] sm:$0x3f]  ;;  %v219_v26 = vpack.c.bf16 %v26_v22, %v25_v21  ;;  %v221_v27 = vpack.c.bf16 %v44_v24, %v43_v23  ;;  %v27_v28 = vld [vmem:[%s378_s1 + $0x40] sm:$0xff]  ;;  %v45_v30 = vld [vmem:[%s378_s1 + $0xd0] sm:$0xff] }
   0x8   :  { %115 = vmatprep.mubr.f32.mxu0 %v18_v25  ;;  %v28_v29 = vld [vmem:[%s378_s1 + $0x48] sm:$0xff]  ;;  %v46_v31 = vld [vmem:[%s378_s1 + $0xd8] sm:$0xff]  ;;  %v29_v34 = vld [vmem:[%s378_s1 + $0x50] sm:$0xff] }
   0x9   :  { %212 = vmatpush3.bf16.msra.mxu0 %v211_v13  ;;  %v223_v32 = vpack.c.bf16 %v28_v29, %v27_v28  ;;  %v225_v33 = vpack.c.bf16 %v46_v31, %v45_v30  ;;  %v30_v35 = vld [vmem:[%s378_s1 + $0x58] sm:$0xff]  ;;  %v47_v36 = vld [vmem:[%s378_s1 + $0xe0] sm:$0xff]  ;;  %v48_v37 = vld [vmem:[%s378_s1 + $0xe8] sm:$0xff] }
   0xa   :  { %214 = vmatprep.subr.bf16.mxu0 %v213_v14  ;;  %v227_v38 = vpack.c.bf16 %v30_v35, %v29_v34  ;;  %v229_v39 = vpack.c.bf16 %v48_v37, %v47_v36  ;;  %v31_v40 = vld [vmem:[%s378_s1 + $0x60] sm:$0xff]  ;;  %v32_v41 = vld [vmem:[%s378_s1 + $0x68] sm:$0xff]  ;;  %v49_v42 = vld [vmem:[%s378_s1 + $0xf0] sm:$0xff] }
   0xb   :  { %v50_v43 = vld [vmem:[%s378_s1 + $0xf8] sm:$0xff]  ;;  %v231_v44 = vpack.c.bf16 %v32_v41, %v31_v40  ;;  %v33_v46 = vld [vmem:[%s378_s1 + $0x70] sm:$0xff]  ;;  %v17_v49 = vld [vmem:[%s379_s0] sm:$0x3f] }
   0xc   :  { %v233_v45 = vpack.c.bf16 %v50_v43, %v49_v42  ;;  %v34_v47 = vld [vmem:[%s378_s1 + $0x78] sm:$0xff]  ;;  %v168_v11 = vld [vmem:[%s380_s2] ss:$0 sm:$0xff] }
   0xd   :  { %216 = vmatpush3.bf16.msra.mxu0 %v215_v19  ;;  %v235_v48 = vpack.c.bf16 %v34_v47, %v33_v46  ;;  %v169_v13 = vld [vmem:[%s381_s3] ss:$0 sm:$0xff] }
   0xe   :  { %218 = vmatprep.subr.bf16.mxu0 %v217_v20 }
  0x11   :  { %220 = vmatpush3.bf16.msra.mxu0 %v219_v26 }
  0x12   :  { %222 = vmatprep.subr.bf16.mxu0 %v221_v27 }
  0x15   :  { %224 = vmatpush3.bf16.msra.mxu0 %v223_v32 }
  0x16   :  { %226 = vmatprep.subr.bf16.mxu0 %v225_v33 }
  0x19   :  { %228 = vmatpush3.bf16.msra.mxu0 %v227_v38 }
  0x1a   :  { %230 = vmatprep.subr.bf16.mxu0 %v229_v39 }
  0x1d   :  { %232 = vmatpush3.bf16.msra.mxu0 %v231_v44 }
  0x1e   :  { %234 = vmatprep.subr.bf16.mxu0 %v233_v45 }
  0x21   :  { %236 = vmatpush3.bf16.msra.mxu0 %v235_v48 }
  0x24   :  { %116 = vmatmul.mubr.f32.vlgmr.msra.gmra.mrb[0].mxu0 %v17_v49 }
  0xf7   :  { %v202_v50 = vpop.f32.mrb[0].mxu0 }
  0xf8   :  { %v203_v51 = vpop.f32.mrb[1].mxu0 }
  0xf9   :  { %v204_v52 = vadd.f32 %v203_v51, %v202_v50 }
  0xfb   :  { %v122_v53 = vsel %vm121_vm0, %v204_v52, 0.0  ;;  %v131_v54 = vmul.f32 %v204_v52, %v204_v52 }
  0xfc   :  { %v123_v55 = vrot.slane %v122_v53, 4 }
  0xfd   :  { %v132_v56 = vsel %vm121_vm0, %v131_v54, 0.0 }
  0xfe   :  { %v124_v57 = vadd.f32 %v123_v55, %v122_v53  ;;  %v133_v58 = vrot.slane %v132_v56, 4 }
 0x100   :  { %v125_v59 = vrot.slane %v124_v57, 2  ;;  %v134_v60 = vadd.f32 %v133_v58, %v132_v56 }
 0x102   :  { %v126_v61 = vadd.f32 %v125_v59, %v124_v57  ;;  %v135_v62 = vrot.slane %v134_v60, 2 }
 0x104   :  { %v127_v63 = vrot.slane %v126_v61, 1  ;;  %v136_v0 = vadd.f32 %v135_v62, %v134_v60 }
 0x106   :  { %v128_v1 = vadd.f32 %v127_v63, %v126_v61  ;;  %v137_v2 = vrot.slane %v136_v0, 1 }
 0x108   :  { %v130_v3 = vmul.f32 0.16666667, %v128_v1  ;;  %v138_v4 = vadd.f32 %v137_v2, %v136_v0 }
 0x10a   :  { %v139_v5 = vmul.f32 0.16666667, %v138_v4  ;;  %v140_v6 = vmul.f32 %v130_v3, %v130_v3  ;;  %v142_v9 = vsub.f32 %v204_v52, %v130_v3 }
 0x10c   :  { %v141_v7 = vsub.f32 %v139_v5, %v140_v6 }
 0x10e   :  { %v143_v8 = vadd.f32 1e-05, %v141_v7 }
 0x110   :  { %237 = vrsqrt.f32 %v143_v8 }
 0x11a   :  { %v238_v10 = vpop.eup %237 }
 0x11b   :  { %v145_v12 = vmul.f32 %v238_v10, %v142_v9 }
 0x11d   :  { %v153_v14 = vmul.f32 %v168_v11, %v145_v12 }
 0x11f   :  { %v161_v15 = vadd.f32 %v169_v13, %v153_v14 }
 0x121   :  { %v162_v16 = vmax.f32 %v161_v15, 0.0 }
 0x123   :  { %163 = vst.msk [vmem:[%s382_s4] sm:$0x3f] %vm121_vm0, %v162_v16 }

// kernel: encoder_forward.5
= control target key start
LH: loop header
LB: loop body
LE: loop exit
PB: predicated region body
PF: predicated region fallthrough
CT: control target
= control target key end

     0   :  { %vm247_vm0 = vcmask 261120   ;;  %s732_s1 = inlined_call_operand.vmem [shape: f32[384,32], index: 1, kind: input, shape index: {}]   ;;  %s733_s0 = inlined_call_operand.vmem [shape: f32[32,384], index: 0, kind: input, shape index: {}]   ;;  %s734_s2 = inlined_call_operand.vmem [shape: f32[1,32], index: 2, kind: input, shape index: {}]   ;;  %s735_s3 = inlined_call_operand.vmem [shape: f32[1,32], index: 3, kind: input, shape index: {}]   ;;  %s736_s4 = inlined_call_operand.vmem [shape: f32[32,32], index: 4, kind: output, shape index: {}]  }
   0x1   :  { %v45_v0 = vld [vmem:[%s732_s1 + $0x80] sm:$0xff]  ;;  %v46_v1 = vld [vmem:[%s732_s1 + $0x88] sm:$0xff]  ;;  %v47_v9 = vld [vmem:[%s732_s1 + $0x90] sm:$0xff] }
   0x2   :  { %v29_v2 = vld [vmem:[%s732_s1] sm:$0xff]  ;;  %v431_v3 = vpack.c.bf16 %v46_v1, %v45_v0  ;;  %v30_v4 = vld [vmem:[%s732_s1 + $0x8] sm:$0xff]  ;;  %v48_v10 = vld [vmem:[%s732_s1 + $0x98] sm:$0xff] }
   0x3   :  { %v61_v5 = vld [vmem:[%s732_s1 + $0x100] sm:$0xff]  ;;  %v62_v6 = vld [vmem:[%s732_s1 + $0x108] sm:$0xff]  ;;  %v433_v7 = vpack.c.bf16 %v30_v4, %v29_v2  ;;  %v31_v11 = vld [vmem:[%s732_s1 + $0x10] sm:$0xff]  ;;  %v435_v12 = vpack.c.bf16 %v48_v10, %v47_v9 }
   0x4   :  { %v463_v8 = vpack.c.bf16 %v62_v6, %v61_v5  ;;  %432 = vmatprep.subr.bf16.mxu0 %v431_v3  ;;  %v32_v13 = vld [vmem:[%s732_s1 + $0x18] sm:$0xff]  ;;  %v63_v14 = vld [vmem:[%s732_s1 + $0x110] sm:$0xff]  ;;  %v49_v18 = vld [vmem:[%s732_s1 + $0xa0] sm:$0xff] }
   0x5   :  { %v64_v15 = vld [vmem:[%s732_s1 + $0x118] sm:$0xff]  ;;  %434 = vmatpush3.bf16.msra.mxu0 %v433_v7  ;;  %v437_v16 = vpack.c.bf16 %v32_v13, %v31_v11  ;;  %v50_v19 = vld [vmem:[%s732_s1 + $0xa8] sm:$0xff]  ;;  %v33_v20 = vld [vmem:[%s732_s1 + $0x20] sm:$0xff] }
   0x6   :  { %464 = vmatprep.subr.bf16.mxu1 %v463_v8  ;;  %v467_v17 = vpack.c.bf16 %v64_v15, %v63_v14  ;;  %436 = vmatprep.subr.bf16.mxu0 %v435_v12  ;;  %v439_v21 = vpack.c.bf16 %v50_v19, %v49_v18  ;;  %v34_v22 = vld [vmem:[%s732_s1 + $0x28] sm:$0xff]  ;;  %v65_v23 = vld [vmem:[%s732_s1 + $0x120] sm:$0xff]  ;;  %v51_v26 = vld [vmem:[%s732_s1 + $0xb0] sm:$0xff] }
   0x7   :  { %466 = vmatpush3.bf16.msra.mxu1 %v463_v8  ;;  %v66_v24 = vld [vmem:[%s732_s1 + $0x128] sm:$0xff]  ;;  %v52_v27 = vld [vmem:[%s732_s1 + $0xb8] sm:$0xff]  ;;  %v67_v28 = vld [vmem:[%s732_s1 + $0x130] sm:$0xff]  ;;  %v441_v30 = vpack.c.bf16 %v34_v22, %v33_v20 }
   0x8   :  { %468 = vmatprep.subr.bf16.mxu1 %v467_v17  ;;  %v471_v25 = vpack.c.bf16 %v66_v24, %v65_v23  ;;  %v68_v29 = vld [vmem:[%s732_s1 + $0x138] sm:$0xff]  ;;  %v443_v31 = vpack.c.bf16 %v52_v27, %v51_v26  ;;  %v35_v32 = vld [vmem:[%s732_s1 + $0x30] sm:$0xff]  ;;  %v53_v35 = vld [vmem:[%s732_s1 + $0xc0] sm:$0xff] }
   0x9   :  { %438 = vmatpush3.bf16.msra.mxu0 %v437_v16  ;;  %v36_v33 = vld [vmem:[%s732_s1 + $0x38] sm:$0xff]  ;;  %v475_v34 = vpack.c.bf16 %v68_v29, %v67_v28  ;;  %v54_v36 = vld [vmem:[%s732_s1 + $0xc8] sm:$0xff]  ;;  %v69_v37 = vld [vmem:[%s732_s1 + $0x140] sm:$0xff] }
   0xa   :  { %440 = vmatprep.subr.bf16.mxu0 %v439_v21  ;;  %v70_v38 = vld [vmem:[%s732_s1 + $0x148] sm:$0xff]  ;;  %v445_v39 = vpack.c.bf16 %v36_v33, %v35_v32  ;;  %v447_v40 = vpack.c.bf16 %v54_v36, %v53_v35  ;;  %v37_v41 = vld [vmem:[%s732_s1 + $0x40] sm:$0xff]  ;;  %v55_v44 = vld [vmem:[%s732_s1 + $0xd0] sm:$0xff] }
   0xb   :  { %470 = vmatpush3.bf16.msra.mxu1 %v467_v17  ;;  %v38_v42 = vld [vmem:[%s732_s1 + $0x48] sm:$0xff]  ;;  %v479_v43 = vpack.c.bf16 %v70_v38, %v69_v37  ;;  %v56_v45 = vld [vmem:[%s732_s1 + $0xd8] sm:$0xff]  ;;  %v71_v46 = vld [vmem:[%s732_s1 + $0x150] sm:$0xff] }
   0xc   :  { %472 = vmatprep.subr.bf16.mxu1 %v471_v25  ;;  %v72_v47 = vld [vmem:[%s732_s1 + $0x158] sm:$0xff]  ;;  %v449_v48 = vpack.c.bf16 %v38_v42, %v37_v41  ;;  %v18_v49 = vld [vmem:[%s733_s0 + $0x8] sm:$0xff]  ;;  %v19_v50 = vld [vmem:[%s733_s0 + $0x10] sm:$0xff]  ;;  %v451_v51 = vpack.c.bf16 %v56_v45, %v55_v44 }
   0xd   :  { %442 = vmatpush3.bf16.msra.mxu0 %v441_v30  ;;  %v39_v52 = vld [vmem:[%s732_s1 + $0x50] sm:$0xff]  ;;  %v40_v53 = vld [vmem:[%s732_s1 + $0x58] sm:$0xff]  ;;  %v483_v54 = vpack.c.bf16 %v72_v47, %v71_v46  ;;  %v57_v55 = vld [vmem:[%s732_s1 + $0xe0] sm:$0xff]  ;;  %141 = vmatprep.mubr.f32.mxu0 %v18_v49 }
   0xe   :  { %444 = vmatprep.subr.bf16.mxu0 %v443_v31  ;;  %v58_v56 = vld [vmem:[%s732_s1 + $0xe8] sm:$0xff]  ;;  %v73_v57 = vld [vmem:[%s732_s1 + $0x160] sm:$0xff]  ;;  %425 = vmatprep.mubr.f32.mxu1 %v19_v50  ;;  %v453_v59 = vpack.c.bf16 %v40_v53, %v39_v52  ;;  %v59_v0 = vld [vmem:[%s732_s1 + $0xf0] sm:$0xff] }
   0xf   :  { %474 = vmatpush3.bf16.msra.mxu1 %v471_v25  ;;  %v74_v58 = vld [vmem:[%s732_s1 + $0x168] sm:$0xff]  ;;  %v455_v60 = vpack.c.bf16 %v58_v56, %v57_v55  ;;  %v41_v61 = vld [vmem:[%s732_s1 + $0x60] sm:$0xff]  ;;  %v60_v1 = vld [vmem:[%s732_s1 + $0xf8] sm:$0xff] }
  0x10   :  { %476 = vmatprep.subr.bf16.mxu1 %v475_v34  ;;  %v42_v62 = vld [vmem:[%s732_s1 + $0x68] sm:$0xff]  ;;  %v487_v63 = vpack.c.bf16 %v74_v58, %v73_v57  ;;  %v75_v2 = vld [vmem:[%s732_s1 + $0x170] sm:$0xff]  ;;  %v76_v3 = vld [vmem:[%s732_s1 + $0x178] sm:$0xff]  ;;  %v459_v5 = vpack.c.bf16 %v60_v1, %v59_v0 }
  0x11   :  { %446 = vmatpush3.bf16.msra.mxu0 %v445_v39  ;;  %v457_v4 = vpack.c.bf16 %v42_v62, %v41_v61  ;;  %v43_v6 = vld [vmem:[%s732_s1 + $0x70] sm:$0xff]  ;;  %v44_v7 = vld [vmem:[%s732_s1 + $0x78] sm:$0xff]  ;;  %v491_v8 = vpack.c.bf16 %v76_v3, %v75_v2  ;;  %v17_v10 = vld [vmem:[%s733_s0] sm:$0xff] }
  0x12   :  { %448 = vmatprep.subr.bf16.mxu0 %v447_v40  ;;  %v461_v9 = vpack.c.bf16 %v44_v7, %v43_v6  ;;  %v22_v11 = vld [vmem:[%s733_s0 + $0x28] sm:$0xff]  ;;  %v21_v12 = vld [vmem:[%s733_s0 + $0x20] sm:$0xff]  ;;  %v20_v14 = vld [vmem:[%s733_s0 + $0x18] sm:$0xff] }
  0x13   :  { %478 = vmatpush3.bf16.msra.mxu1 %v475_v34  ;;  %v25_v13 = vld [vmem:[%s733_s0 + $0x40] sm:$0xff]  ;;  %v24_v15 = vld [vmem:[%s733_s0 + $0x38] sm:$0xff]  ;;  %v23_v17 = vld [vmem:[%s733_s0 + $0x30] sm:$0xff] }
  0x14   :  { %480 = vmatprep.subr.bf16.mxu1 %v479_v43  ;;  %v28_v16 = vld [vmem:[%s733_s0 + $0x58] sm:$0xff]  ;;  %v27_v18 = vld [vmem:[%s733_s0 + $0x50] sm:$0xff]  ;;  %v26_v19 = vld [vmem:[%s733_s0 + $0x48] sm:$0xff] }
  0x15   :  { %450 = vmatpush3.bf16.msra.mxu0 %v449_v48 }
  0x16   :  { %452 = vmatprep.subr.bf16.mxu0 %v451_v51 }
  0x17   :  { %482 = vmatpush3.bf16.msra.mxu1 %v479_v43 }
  0x18   :  { %484 = vmatprep.subr.bf16.mxu1 %v483_v54 }
  0x19   :  { %454 = vmatpush3.bf16.msra.mxu0 %v453_v59 }
  0x1a   :  { %456 = vmatprep.subr.bf16.mxu0 %v455_v60 }
  0x1b   :  { %486 = vmatpush3.bf16.msra.mxu1 %v483_v54 }
  0x1c   :  { %488 = vmatprep.subr.bf16.mxu1 %v487_v63 }
  0x1d   :  { %458 = vmatpush3.bf16.msra.mxu0 %v457_v4 }
  0x1e   :  { %460 = vmatprep.subr.bf16.mxu0 %v459_v5 }
  0x1f   :  { %490 = vmatpush3.bf16.msra.mxu1 %v487_v63 }
  0x20   :  { %492 = vmatprep.subr.bf16.mxu1 %v491_v8 }
  0x21   :  { %462 = vmatpush3.bf16.msra.mxu0 %v461_v9 }
  0x23   :  { %494 = vmatpush3.bf16.msra.mxu1 %v491_v8 }
  0x24   :  { %142 = vmatmul.mubr.f32.vlgmr.msra.gmra.mrb[0].mxu0 %v17_v10 }
  0x25   :  { %146 = vmatprep.mubr.f32.mxu0 %v21_v12 }
  0x26   :  { %426 = vmatmul.mubr.f32.vlgmr.msra.gmra.mrb[0].mxu1 %v22_v11 }
  0x27   :  { %428 = vmatprep.mubr.f32.mxu1 %v25_v13 }
  0x28   :  { %147 = vmatmul.mubr.f32.gmra.mrb[2].mxu0 %v20_v14 }
  0x29   :  { %151 = vmatprep.mubr.f32.mxu0 %v24_v15 }
  0x2a   :  { %429 = vmatmul.mubr.f32.gmra.mrb[2].mxu1 %v28_v16  ;;  %v327_v16 = vld [vmem:[%s734_s2] ss:$0 sm:$0xff] }
  0x2c   :  { %152 = vmatmul.mubr.f32.gmra.mrb[4].mxu0 %v23_v17 }
  0x2d   :  { %156 = vmatprep.mubr.f32.mxu0 %v27_v18 }
  0x30   :  { %157 = vmatmul.mubr.f32.gmra.mrb[6].mxu0 %v26_v19 }
  0xf7   :  { %v361_v20 = vpop.f32.mrb[0].mxu0 }
  0xf8   :  { %v362_v21 = vpop.f32.mrb[1].mxu0 }
  0xf9   :  { %v427_v22 = vpop.f32.mrb[0].mxu1  ;;  %v363_v23 = vadd.f32 %v362_v21, %v361_v20  ;;  %v328_v21 = vld [vmem:[%s735_s3] ss:$0 sm:$0xff] }
  0xfa   :  { %v228_v24 = vpop.f32.mrb[1].mxu1 }
  0xfb   :  { %v229_v25 = vadd.f32 %v363_v23, %v228_v24  ;;  %v364_v26 = vpop.f32.mrb[2].mxu0 }
  0xfc   :  { %v365_v27 = vpop.f32.mrb[3].mxu0 }
  0xfd   :  { %v430_v28 = vpop.f32.mrb[2].mxu1  ;;  %v366_v29 = vadd.f32 %v365_v27, %v364_v26  ;;  %v263_v31 = vmul.f32 %v229_v25, %v229_v25  ;;  %v248_v35 = vsel %vm247_vm0, %v229_v25, 0.0 }
  0xfe   :  { %v238_v30 = vpop.f32.mrb[3].mxu1 }
  0xff   :  { %v234_v32 = vadd.f32 %v427_v22, %v366_v29  ;;  %v367_v33 = vpop.f32.mrb[4].mxu0  ;;  %v267_v40 = vsel %vm247_vm0, %v263_v31, 0.0 }
 0x100   :  { %v368_v34 = vpop.f32.mrb[5].mxu0 }
 0x101   :  { %v249_v36 = vsel %vm247_vm0, %v234_v32, 0.0  ;;  %v264_v37 = vmul.f32 %v234_v32, %v234_v32  ;;  %v369_v38 = vadd.f32 %v368_v34, %v367_v33 }
 0x102   :  { %v250_v39 = vadd.f32 %v249_v36, %v248_v35 }
 0x103   :  { %v268_v41 = vsel %vm247_vm0, %v264_v37, 0.0  ;;  %v239_v42 = vadd.f32 %v369_v38, %v238_v30  ;;  %v370_v43 = vpop.f32.mrb[6].mxu0 }
 0x104   :  { %v269_v44 = vadd.f32 %v268_v41, %v267_v40  ;;  %v371_v45 = vpop.f32.mrb[7].mxu0 }
 0x105   :  { %v251_v46 = vsel %vm247_vm0, %v239_v42, 0.0  ;;  %v265_v47 = vmul.f32 %v239_v42, %v239_v42  ;;  %v372_v48 = vadd.f32 %v371_v45, %v370_v43 }
 0x106   :  { %v252_v49 = vadd.f32 %v251_v46, %v250_v39 }
 0x107   :  { %v270_v50 = vsel %vm247_vm0, %v265_v47, 0.0  ;;  %v244_v51 = vadd.f32 %v430_v28, %v372_v48 }
 0x108   :  { %v271_v52 = vadd.f32 %v270_v50, %v269_v44 }
 0x109   :  { %v253_v53 = vsel %vm247_vm0, %v244_v51, 0.0  ;;  %v266_v54 = vmul.f32 %v244_v51, %v244_v51 }
 0x10a   :  { %v254_v55 = vadd.f32 %v253_v53, %v252_v49 }
 0x10b   :  { %v272_v56 = vsel %vm247_vm0, %v266_v54, 0.0 }
 0x10c   :  { %v255_v57 = vrot.slane %v254_v55, 4  ;;  %v273_v58 = vadd.f32 %v272_v56, %v271_v52 }
 0x10e   :  { %v256_v59 = vadd.f32 %v255_v57, %v254_v55  ;;  %v274_v60 = vrot.slane %v273_v58, 4 }
 0x110   :  { %v257_v61 = vrot.slane %v256_v59, 2  ;;  %v275_v62 = vadd.f32 %v274_v60, %v273_v58 }
 0x112   :  { %v258_v63 = vadd.f32 %v257_v61, %v256_v59  ;;  %v276_v0 = vrot.slane %v275_v62, 2 }
 0x114   :  { %v259_v1 = vrot.slane %v258_v63, 1  ;;  %v277_v2 = vadd.f32 %v276_v0, %v275_v62 }
 0x116   :  { %v260_v3 = vadd.f32 %v259_v1, %v258_v63  ;;  %v278_v4 = vrot.slane %v277_v2, 1 }
 0x118   :  { %v262_v5 = vmul.f32 0.03125, %v260_v3  ;;  %v279_v6 = vadd.f32 %v278_v4, %v277_v2 }
 0x11a   :  { %v280_v7 = vmul.f32 0.03125, %v279_v6  ;;  %v281_v8 = vmul.f32 %v262_v5, %v262_v5  ;;  %v283_v9 = vsub.f32 %v229_v25, %v262_v5  ;;  %v284_v10 = vsub.f32 %v234_v32, %v262_v5 }
 0x11b   :  { %v285_v11 = vsub.f32 %v239_v42, %v262_v5  ;;  %v286_v12 = vsub.f32 %v244_v51, %v262_v5 }
 0x11c   :  { %v282_v13 = vsub.f32 %v280_v7, %v281_v8 }
 0x11e   :  { %v287_v14 = vadd.f32 1e-05, %v282_v13 }
 0x120   :  { %495 = vrsqrt.f32 %v287_v14 }
 0x12a   :  { %v496_v15 = vpop.eup %495 }
 0x12b   :  { %v289_v17 = vmul.f32 %v496_v15, %v283_v9  ;;  %v290_v18 = vmul.f32 %v496_v15, %v284_v10  ;;  %v291_v19 = vmul.f32 %v496_v15, %v285_v11  ;;  %v292_v20 = vmul.f32 %v496_v15, %v286_v12 }
 0x12d   :  { %v300_v22 = vmul.f32 %v327_v16, %v289_v17  ;;  %v301_v23 = vmul.f32 %v327_v16, %v290_v18  ;;  %v302_v24 = vmul.f32 %v327_v16, %v291_v19  ;;  %v303_v25 = vmul.f32 %v327_v16, %v292_v20 }
 0x12f   :  { %v311_v26 = vadd.f32 %v328_v21, %v300_v22  ;;  %v312_v27 = vadd.f32 %v328_v21, %v301_v23  ;;  %v313_v28 = vadd.f32 %v328_v21, %v302_v24  ;;  %v314_v29 = vadd.f32 %v328_v21, %v303_v25 }
 0x131   :  { %v315_v30 = vmax.f32 %v311_v26, 0.0  ;;  %v316_v31 = vmax.f32 %v312_v27, 0.0  ;;  %v317_v32 = vmax.f32 %v313_v28, 0.0  ;;  %v318_v33 = vmax.f32 %v314_v29, 0.0 }
 0x133   :  { %319 = vst.msk [vmem:[%s736_s4] sm:$0xff] %vm247_vm0, %v315_v30  ;;  %320 = vst.msk [vmem:[%s736_s4 + $0x8] sm:$0xff] %vm247_vm0, %v316_v31 }
 0x134   :  { %321 = vst.msk [vmem:[%s736_s4 + $0x10] sm:$0xff] %vm247_vm0, %v317_v32  ;;  %322 = vst.msk [vmem:[%s736_s4 + $0x18] sm:$0xff] %vm247_vm0, %v318_v33 }

// kernel: encoder_forward.7
= control target key start
LH: loop header
LB: loop body
LE: loop exit
PB: predicated region body
PF: predicated region fallthrough
CT: control target
= control target key end

     0   :  { %v699_v0 = vmov 0.0|0.0   ;;  %vm700_vm0 = vmmov 0   ;;  %v701_v8 = vmov 0.0   ;;  %vm37_vm1 = vcmask 261120   ;;  %s702_s21 = smov 96   ;;  %s705_s22 = smov 48   ;;  %s852_s1 = inlined_call_operand.vmem [shape: f32[32,96], index: 1, kind: input, shape index: {}]   ;;  %s853_s3 = inlined_call_operand.vmem [shape: f32[32,96], index: 3, kind: input, shape index: {}]   ;;  %s854_s0 = inlined_call_operand.vmem [shape: f32[6,32], index: 0, kind: input, shape index: {}]   ;;  %s855_s5 = inlined_call_operand.vmem [shape: f32[2,32], index: 5, kind: input, shape index: {}]   ;;  %s856_s2 = inlined_call_operand.vmem [shape: f32[1,96], index: 2, kind: input, shape index: {}]   ;;  %s857_s4 = inlined_call_operand.vmem [shape: f32[1,96], index: 4, kind: input, shape index: {}]   ;;  %s858_s6 = inlined_call_operand.vmem [shape: f32[6,32], index: 6, kind: output, shape index: {0}]   ;;  %s859_s7 = inlined_call_operand.vmem [shape: f32[2,32], index: 7, kind: output, shape index: {1}]  }
   0x1   :  { %636 = vmatprep.subr.bf16.mxu0 %v699_v0  ;;  %642 = vmatprep.subr.bf16.mxu1 %v699_v0  ;;  %v26_v1 = vld [vmem:[%s852_s1] sm:$0xff]  ;;  %v27_v2 = vld [vmem:[%s852_s1 + $0x8] sm:$0xff]  ;;  %v28_v6 = vld [vmem:[%s852_s1 + $0x10] sm:$0xff]  ;;  %vm111_vm2 = vcmask 783360   ;;  %s706_s23 = smov 112   ;;  %s707_s24 = smov 80  }
   0x2   :  { %v114_v3 = vld [vmem:[%s853_s3] sm:$0xff]  ;;  %v637_v4 = vpack.c.bf16 %v27_v2, %v26_v1  ;;  %v115_v5 = vld [vmem:[%s853_s3 + $0x8] sm:$0xff]  ;;  %v29_v7 = vld [vmem:[%s852_s1 + $0x18] sm:$0xff]  ;;  %600 = vmatprep.mubr.msk.f32.mxu0 %vm700_vm0, %v701_v8  ;;  %611 = vmatprep.mubr.msk.f32.mxu1 %vm700_vm0, %v701_v8  ;;  %vm258_vm3 = vcmask 123904   ;;  %vm264_vm4 = vcmask 255104   ;;  %vm266_vm5 = vcmask 130048  }
   0x3   :  { %v643_v9 = vpack.c.bf16 %v115_v5, %v114_v3  ;;  %v116_v10 = vld [vmem:[%s853_s3 + $0x10] sm:$0xff]  ;;  %v117_v11 = vld [vmem:[%s853_s3 + $0x18] sm:$0xff]  ;;  %v640_v12 = vpack.c.bf16 %v29_v7, %v28_v6  ;;  %v25_v14 = vld [vmem:[%s854_s0] sm:$0x3f]  ;;  %vm549_vm6 = vcmask 254976  }
   0x4   :  { %638 = vmatpush3.bf16.msra.mxu0 %v637_v4  ;;  %v646_v13 = vpack.c.bf16 %v117_v11, %v116_v10  ;;  %v113_v15 = vld [vmem:[%s855_s5] sm:$0x3] }
   0x5   :  { %644 = vmatpush3.bf16.msra.mxu1 %v643_v9  ;;  %639 = vmatprep.subr.bf16.mxu0 %v699_v0  ;;  %v559_v16 = vld [vmem:[%s856_s2] ss:$0 sm:$0xff]  ;;  %s703_s2 = smov 32  }
   0x6   :  { %645 = vmatprep.subr.bf16.mxu1 %v699_v0  ;;  %v790_v17 = vld [vmem:[%s857_s4] ss:$0 sm:$0xff]  ;;  %s704_s4 = smov 16  }
   0x8   :  { %641 = vmatpush3.bf16.msra.mxu0 %v640_v12 }
   0x9   :  { %647 = vmatpush3.bf16.msra.mxu1 %v646_v13  ;;  %648 = vmatprep.subr.bf16.mxu0 %v699_v0 }
   0xa   :  { %654 = vmatprep.subr.bf16.mxu1 %v699_v0 }
   0xb   :  { %601 = vmatmul.mubr.msk.f32.vlgmr.msra.gmra.mrb[0].mxu0 %vm37_vm1, %v25_v14 }
   0xc   :  { %612 = vmatmul.mubr.msk.f32.vlgmr.msra.gmra.mrb[0].mxu1 %vm37_vm1, %v113_v15  ;;  %650 = vmatpush3.bf16.msra.mxu0 %v643_v9 }
   0xd   :  { %651 = vmatprep.subr.bf16.mxu0 %v699_v0  ;;  %622 = vmatprep.mubr.msk.f32.mxu0 %vm700_vm0, %v701_v8 }
   0xe   :  { %656 = vmatpush3.bf16.msra.mxu1 %v643_v9  ;;  %633 = vmatprep.mubr.msk.f32.mxu1 %vm700_vm0, %v701_v8 }
   0xf   :  { %657 = vmatprep.subr.bf16.mxu1 %v699_v0 }
  0x10   :  { %653 = vmatpush3.bf16.msra.mxu0 %v646_v13 }
  0x12   :  { %659 = vmatpush3.bf16.msra.mxu1 %v646_v13 }
  0xde   :  { %v107_v18 = vpop.f32.mrb[0].mxu0 }
  0xdf   :  { %v108_v19 = vadd.f32 %v559_v16, %v107_v18  ;;  %v194_v20 = vpop.f32.mrb[0].mxu1  ;;  %v602_v21 = vpop.f32.mrb[1].mxu0 }
  0xe0   :  { %v195_v22 = vadd.f32 %v790_v17, %v194_v20  ;;  %v613_v23 = vpop.f32.mrb[1].mxu1 }
  0xe1   :  { %112 = vst.msk [vmem:[#allocation2] sm:$0x3f] %vm111_vm2, %v108_v19 }
  0xe2   :  { %208 = vrot.lane.b32.xlu0 %v195_v22, %s702_s21 }
  0xe8   :  { %v198_v24 = vld [vmem:[#allocation2] sm:$0x3]  ;;  %v199_v25 = vld [vmem:[#allocation2 + $0x4] sm:$0x3]  ;;  %v352_v63 = vld [vmem:[#allocation2 + $0x2] sm:$0x3] }
  0xe9   :  { %v200_v26 = vadd.f32 %v198_v24, %v195_v22  ;;  %v229_v27 = vadd.f32 %v199_v25, %v195_v22 }
  0xeb   :  { %v563_v28 = vmul.f32 -1.442695, %v200_v26  ;;  %v564_v29 = vmul.f32 -1.442695, %v229_v27  ;;  %v482_v26 = vld [vmem:[#allocation2 + $0x4] sm:$0x3] }
  0xec   :  { %v483_v27 = vld [vmem:[#allocation2] sm:$0x3] }
  0xed   :  { %669 = vpow2.f32 %v563_v28 }
  0xee   :  { %671 = vpow2.f32 %v564_v29 }
  0xf7   :  { %v670_v30 = vpop.eup %669 }
  0xf8   :  { %v672_v31 = vpop.eup %671  ;;  %v204_v32 = vadd.f32 1.0, %v670_v30 }
  0xf9   :  { %v233_v33 = vadd.f32 1.0, %v672_v31 }
  0xfa   :  { %673 = vrcp.f32 %v204_v32 }
  0xfb   :  { %675 = vrcp.f32 %v233_v33 }
 0x104   :  { %v674_v34 = vpop.eup %673 }
 0x105   :  { %v676_v35 = vpop.eup %675  ;;  %v218_v46 = vsub.f32 1.0, %v674_v34 }
 0x106   :  { %v243_v52 = vsub.f32 1.0, %v676_v35 }
 0x154   :  { %v209_v36 = vpop.permute.xlu0 %208 }
 0x155   :  { %v211_v37 = vmul.f32 %v674_v34, %v209_v36  ;;  %v236_v38 = vmul.f32 %v676_v35, %v209_v36 }
 0x157   :  { %238 = vrot.lane.b32.xlu1 %v236_v38, %s703_s2  ;;  %213 = vrot.lane.b32.xlu0 %v211_v37, %s703_s2 }
 0x15b   :  { %224 = vrot.lane.b32.xlu0 %v113_v15, %s704_s4 }
 0x15f   :  { %249 = vrot.lane.b32.xlu0 %v113_v15, %s705_s22 }
 0x1c9   :  { %v214_v39 = vpop.permute.xlu0 %213  ;;  %v239_v40 = vpop.permute.xlu1 %238 }
 0x1ca   :  { %v216_v41 = vadd.f32 %v214_v39, %v198_v24  ;;  %v241_v42 = vadd.f32 %v239_v40, %v199_v25 }
 0x1cc   :  { %677 = vtanh.f32 %v216_v41 }
 0x1cd   :  { %679 = vtanh.f32 %v241_v42  ;;  %v225_v45 = vpop.permute.xlu0 %224 }
 0x1ce   :  { %v227_v48 = vmul.f32 %v674_v34, %v225_v45 }
 0x1d1   :  { %v250_v50 = vpop.permute.xlu0 %249 }
 0x1d2   :  { %v252_v54 = vmul.f32 %v676_v35, %v250_v50 }
 0x1d6   :  { %v678_v43 = vpop.eup %677 }
 0x1d7   :  { %220 = vrot.lane.b32.xlu1 %v678_v43, %s706_s23  ;;  %v680_v44 = vpop.eup %679 }
 0x1db   :  { %245 = vrot.lane.b32.xlu1 %v680_v44, %s706_s23 }
 0x249   :  { %v221_v47 = vpop.permute.xlu1 %220 }
 0x24a   :  { %v223_v49 = vmul.f32 %v221_v47, %v218_v46 }
 0x24c   :  { %v228_v51 = vadd.f32 %v227_v48, %v223_v49 }
 0x24d   :  { %v246_v53 = vpop.permute.xlu1 %245 }
 0x24e   :  { %v248_v55 = vmul.f32 %v246_v53, %v243_v52  ;;  %255 = vrot.lane.b32.xlu1 %v228_v51, %s706_s23 }
 0x250   :  { %v253_v56 = vadd.f32 %v252_v54, %v248_v55 }
 0x252   :  { %261 = vrot.lane.b32.xlu0 %v253_v56, %s707_s24 }
 0x2c0   :  { %v256_v57 = vpop.permute.xlu1 %255 }
 0x2c1   :  { %259 = vst.msk [vmem:[%s858_s6] sm:$0x3] %vm258_vm3, %v256_v57 }
 0x2c4   :  { %v262_v58 = vpop.permute.xlu0 %261 }
 0x2c5   :  { %265 = vst.msk [vmem:[%s858_s6 + $0x4] sm:$0x3] %vm264_vm4, %v262_v58  ;;  %v267_v59 = vsel %vm266_vm5, %v256_v57, %v262_v58 }
 0x2c6   :  { %623 = vmatmul.mubr.msk.f32.vlgmr.msra.gmra.mrb[2].mxu0 %vm37_vm1, %v267_v59 }
 0x399   :  { %v348_v60 = vpop.f32.mrb[2].mxu0 }
 0x39a   :  { %v349_v61 = vadd.f32 %v790_v17, %v348_v60  ;;  %v624_v62 = vpop.f32.mrb[3].mxu0 }
 0x39c   :  { %361 = vrot.lane.b32.xlu1 %v349_v61, %s702_s21  ;;  %v353_v0 = vadd.f32 %v352_v63, %v349_v61 }
 0x39e   :  { %v567_v1 = vmul.f32 -1.442695, %v353_v0 }
 0x3a0   :  { %681 = vpow2.f32 %v567_v1 }
 0x3aa   :  { %v682_v2 = vpop.eup %681 }
 0x3ab   :  { %v357_v3 = vadd.f32 1.0, %v682_v2 }
 0x3ad   :  { %683 = vrcp.f32 %v357_v3 }
 0x3b7   :  { %v684_v4 = vpop.eup %683 }
 0x3b8   :  { %v371_v11 = vsub.f32 1.0, %v684_v4 }
 0x40e   :  { %v362_v5 = vpop.permute.xlu1 %361 }
 0x40f   :  { %v364_v6 = vmul.f32 %v684_v4, %v362_v5 }
 0x411   :  { %366 = vrot.lane.b32.xlu0 %v364_v6, %s703_s2 }
 0x415   :  { %377 = vrot.lane.b32.xlu0 %v267_v59, %s704_s4 }
 0x483   :  { %v367_v7 = vpop.permute.xlu0 %366 }
 0x484   :  { %v369_v8 = vadd.f32 %v367_v7, %v352_v63 }
 0x486   :  { %685 = vtanh.f32 %v369_v8 }
 0x487   :  { %v378_v10 = vpop.permute.xlu0 %377 }
 0x488   :  { %v380_v13 = vmul.f32 %v684_v4, %v378_v10 }
 0x490   :  { %v686_v9 = vpop.eup %685 }
 0x491   :  { %373 = vrot.lane.b32.xlu1 %v686_v9, %s706_s23 }
 0x495   :  { %382 = vrot.lane.b32.xlu1 %v267_v59, %s705_s22 }
 0x503   :  { %v374_v12 = vpop.permute.xlu1 %373 }
 0x504   :  { %v376_v14 = vmul.f32 %v374_v12, %v371_v11 }
 0x506   :  { %v381_v15 = vadd.f32 %v380_v13, %v376_v14 }
 0x507   :  { %v383_v16 = vpop.permute.xlu1 %382 }
 0x508   :  { %v385_v18 = vmul.f32 %v684_v4, %v383_v16  ;;  %388 = vrot.lane.b32.xlu0 %v381_v15, %s706_s23 }
 0x50a   :  { %v386_v19 = vadd.f32 %v385_v18, %v376_v14 }
 0x50c   :  { %393 = vrot.lane.b32.xlu1 %v386_v19, %s707_s24 }
 0x57a   :  { %v389_v20 = vpop.permute.xlu0 %388 }
 0x57b   :  { %391 = vst.msk [vmem:[%s858_s6 + $0x2] sm:$0x3] %vm258_vm3, %v389_v20 }
 0x57e   :  { %v394_v21 = vpop.permute.xlu1 %393 }
 0x57f   :  { %396 = vst.msk [vmem:[%s858_s6 + $0x2] sm:$0x3] %vm264_vm4, %v394_v21  ;;  %v397_v22 = vsel %vm266_vm5, %v389_v20, %v394_v21 }
 0x580   :  { %634 = vmatmul.mubr.msk.f32.vlgmr.msra.gmra.mrb[2].mxu1 %vm37_vm1, %v397_v22 }
 0x653   :  { %v478_v23 = vpop.f32.mrb[2].mxu1 }
 0x654   :  { %v479_v24 = vadd.f32 %v790_v17, %v478_v23  ;;  %v635_v25 = vpop.f32.mrb[3].mxu1 }
 0x656   :  { %492 = vrot.lane.b32.xlu0 %v479_v24, %s702_s21  ;;  %v484_v28 = vadd.f32 %v482_v26, %v479_v24  ;;  %v513_v29 = vadd.f32 %v483_v27, %v479_v24 }
 0x658   :  { %v570_v30 = vmul.f32 -1.442695, %v484_v28  ;;  %v571_v31 = vmul.f32 -1.442695, %v513_v29 }
 0x65a   :  { %687 = vpow2.f32 %v570_v30 }
 0x65b   :  { %689 = vpow2.f32 %v571_v31 }
 0x664   :  { %v688_v32 = vpop.eup %687 }
 0x665   :  { %v690_v33 = vpop.eup %689  ;;  %v488_v34 = vadd.f32 1.0, %v688_v32 }
 0x666   :  { %v517_v35 = vadd.f32 1.0, %v690_v33 }
 0x667   :  { %691 = vrcp.f32 %v488_v34 }
 0x668   :  { %693 = vrcp.f32 %v517_v35 }
 0x671   :  { %v692_v36 = vpop.eup %691 }
 0x672   :  { %v694_v37 = vpop.eup %693  ;;  %v502_v47 = vsub.f32 1.0, %v692_v36 }
 0x673   :  { %v527_v53 = vsub.f32 1.0, %v694_v37 }
 0x6c8   :  { %v493_v17 = vpop.permute.xlu0 %492 }
 0x6c9   :  { %v495_v38 = vmul.f32 %v692_v36, %v493_v17  ;;  %v520_v39 = vmul.f32 %v694_v37, %v493_v17 }
 0x6cb   :  { %522 = vrot.lane.b32.xlu0 %v520_v39, %s703_s2  ;;  %497 = vrot.lane.b32.xlu1 %v495_v38, %s703_s2 }
 0x6cf   :  { %508 = vrot.lane.b32.xlu0 %v397_v22, %s704_s4 }
 0x6d3   :  { %533 = vrot.lane.b32.xlu0 %v397_v22, %s705_s22 }
 0x73d   :  { %v498_v40 = vpop.permute.xlu1 %497  ;;  %v523_v41 = vpop.permute.xlu0 %522 }
 0x73e   :  { %v500_v42 = vadd.f32 %v498_v40, %v482_v26  ;;  %v525_v43 = vadd.f32 %v523_v41, %v483_v27 }
 0x740   :  { %695 = vtanh.f32 %v500_v42 }
 0x741   :  { %697 = vtanh.f32 %v525_v43  ;;  %v509_v46 = vpop.permute.xlu0 %508 }
 0x742   :  { %v511_v49 = vmul.f32 %v692_v36, %v509_v46 }
 0x745   :  { %v534_v51 = vpop.permute.xlu0 %533 }
 0x746   :  { %v536_v55 = vmul.f32 %v694_v37, %v534_v51 }
 0x74a   :  { %v696_v44 = vpop.eup %695 }
 0x74b   :  { %504 = vrot.lane.b32.xlu1 %v696_v44, %s706_s23  ;;  %v698_v45 = vpop.eup %697 }
 0x74f   :  { %529 = vrot.lane.b32.xlu1 %v698_v45, %s706_s23 }
 0x7bd   :  { %v505_v48 = vpop.permute.xlu1 %504 }
 0x7be   :  { %v507_v50 = vmul.f32 %v505_v48, %v502_v47 }
 0x7c0   :  { %v512_v52 = vadd.f32 %v511_v49, %v507_v50 }
 0x7c1   :  { %v530_v54 = vpop.permute.xlu1 %529 }
 0x7c2   :  { %v532_v56 = vmul.f32 %v530_v54, %v527_v53  ;;  %539 = vrot.lane.b32.xlu1 %v512_v52, %s706_s23 }
 0x7c4   :  { %v537_v57 = vadd.f32 %v536_v55, %v532_v56 }
 0x7c6   :  { %544 = vrot.lane.b32.xlu0 %v537_v57, %s707_s24 }
 0x834   :  { %v540_v58 = vpop.permute.xlu1 %539 }
 0x835   :  { %542 = vst.msk [vmem:[%s858_s6 + $0x4] sm:$0x3] %vm258_vm3, %v540_v58 }
 0x838   :  { %v545_v59 = vpop.permute.xlu0 %544 }
 0x839   :  { %547 = vst.msk [vmem:[%s858_s6] sm:$0x3] %vm264_vm4, %v545_v59  ;;  %v548_v60 = vsel %vm266_vm5, %v540_v58, %v545_v59 }
 0x83a   :  { %550 = vst.msk [vmem:[%s859_s7] sm:$0x3] %vm549_vm6, %v548_v60 }

</bundles_post_ra>
